<compile_context>
chip_gen: v6e
topology: v6e:2x2x1
jax: 0.10.0
libtpu: 0.0.40
codegen_flags: <defaults>
</compile_context>

<pallas_src>
import jax
import jax.numpy as jnp
from jax.experimental import pallas as pl
from jax.experimental.pallas import tpu as pltpu

# ---------------- configuration (small synthetic shapes) ----------------
B, M, C_LAT = 2, 8, 32      # batch, latent seq len, num_latent_channels
O, C_Q = 4, 32              # num output queries, num_output_query_channels
H = 4                       # num_cross_attention_heads
D_QK = C_Q                  # default num_qk_channels = num_q_input_channels
D_V = D_QK                  # default num_v_channels  = num_qk_channels
WIDEN = 1                   # cross_attention_widening_factor
HID = WIDEN * C_Q
N_CLS = 10                  # classification output adapter classes
N_CLS_PAD = 128             # lane-padded output width (sliced back to N_CLS in wrapper)
EPS = 1e-5                  # nn.LayerNorm default eps
INIT_SCALE = 0.02

D_HQK = D_QK // H           # per-head qk channels
D_HV = D_V // H             # per-head v channels

# Row layout of the packed "small parameter" block: one (16, 128) f32 array replaces
# 12 separately pipelined sub-vreg inputs (fewer DMA descriptors / BlockSpec windows).
(ROW_LNQ_W, ROW_LNQ_B, ROW_LNKV_W, ROW_LNKV_B,
 ROW_BQ, ROW_BKV, ROW_BO,
 ROW_LNM_W, ROW_LNM_B, ROW_B1, ROW_B2, ROW_BC) = range(12)
VEC_ROWS, VEC_LANES = 16, 128

# Column layout of the packed bf16 weight slab.  Every weight starts at a 128-lane
# boundary so static in-kernel slices never straddle a vreg.  Packing into one slab is
# valid here because all weights share the same number of input rows (C_Q == C_LAT ==
# D_V == HID == 32); at other shapes they would need row padding.
WQ_OFF, WKV_OFF, WO_OFF, W1_OFF, W2_OFF, WC_OFF = 0, 128, 256, 384, 512, 640
SLAB_LANES = 768
SLAB_ROWS = C_Q


def _layernorm(x, w, b):
    mu = jnp.mean(x, axis=-1, keepdims=True)
    var = jnp.mean((x - mu) ** 2, axis=-1, keepdims=True)
    return (x - mu) * jax.lax.rsqrt(var + EPS) * w + b


def _gelu_exact(x):
    # nn.GELU() default is the exact (erf) formulation.
    return 0.5 * x * (1.0 + jax.lax.erf(x * (2.0 ** -0.5)))


def decoder_kernel(x_ref, q_ref, vec_ref, w_ref, out_ref):
    # ---- unpack packed small parameters (static slices, zero runtime cost) ----
    vec = vec_ref[...]                                  # (16, 128) f32
    lnq_w, lnq_b = vec[ROW_LNQ_W, :C_Q], vec[ROW_LNQ_B, :C_Q]
    lnkv_w, lnkv_b = vec[ROW_LNKV_W, :C_LAT], vec[ROW_LNKV_B, :C_LAT]
    bq = vec[ROW_BQ, :D_QK]
    bkv = vec[ROW_BKV, :D_QK + D_V]                     # fused K|V bias
    bo = vec[ROW_BO, :C_Q]
    lnm_w, lnm_b = vec[ROW_LNM_W, :C_Q], vec[ROW_LNM_B, :C_Q]
    b1, b2 = vec[ROW_B1, :HID], vec[ROW_B2, :C_Q]
    bc = vec[ROW_BC, :]                                 # already padded to 128 lanes

    # ---- unpack packed bf16 weight slab (static, 128-lane-aligned slices) ----
    w = w_ref[...]                                      # (32, 768) bf16
    wq = w[:, WQ_OFF:WQ_OFF + D_QK]                     # (C_Q,   D_QK)
    wkv = w[:, WKV_OFF:WKV_OFF + D_QK + D_V]            # (C_LAT, D_QK+D_V) fused K|V
    wo = w[:, WO_OFF:WO_OFF + C_Q]                      # (D_V,   C_Q)
    w1 = w[:, W1_OFF:W1_OFF + HID]                      # (C_Q,   HID)
    w2 = w[:, W2_OFF:W2_OFF + C_Q]                      # (HID,   C_Q)
    wc = w[:, WC_OFF:WC_OFF + N_CLS_PAD]                # (C_Q,   128) lane-dense

    x = x_ref[...].reshape(B * M, C_LAT)                # whole batch, one slab (16, 32)
    q0 = q_ref[...]                                     # (O, C_Q) batch-invariant query

    # ---- batch-invariant query path: computed exactly once ----
    qn = _layernorm(q0, lnq_w, lnq_b)
    Q = jnp.dot(qn.astype(jnp.bfloat16), wq,
                preferred_element_type=jnp.float32) + bq            # (O, D_QK)
    Q = Q * (D_HQK ** -0.5)                                         # fold softmax scale once
    Qb = jnp.broadcast_to(Q.astype(jnp.bfloat16)[None], (B, O, D_QK))

    # ---- fused K/V projection over the whole flattened batch (ONE matmul) ----
    kvn = _layernorm(x, lnkv_w, lnkv_b).astype(jnp.bfloat16)        # (B*M, C_LAT)
    KV = jnp.dot(kvn, wkv, preferred_element_type=jnp.float32) + bkv  # (B*M, 64)
    Kb = KV[:, :D_QK].reshape(B, M, D_QK).astype(jnp.bfloat16)
    Vb = KV[:, D_QK:D_QK + D_V].reshape(B, M, D_V).astype(jnp.bfloat16)

    # ---- attention: batched over B per head; head outputs stay in registers and are
    #      lane-concatenated so the output projection is a single fused matmul. ----
    head_outs = []
    for h in range(H):
        Qh = Qb[:, :, h * D_HQK:(h + 1) * D_HQK]                    # (B, O, d)
        Kh = Kb[:, :, h * D_HQK:(h + 1) * D_HQK]                    # (B, M, d)
        Vh = Vb[:, :, h * D_HV:(h + 1) * D_HV]                      # (B, M, dv)
        s = jnp.einsum('bod,bmd->bom', Qh, Kh,
                       preferred_element_type=jnp.float32)          # (B, O, M), scale in Q
        s = s - jnp.max(s, axis=-1, keepdims=True)
        p = jnp.exp(s)
        p = p * pl.reciprocal(jnp.sum(p, axis=-1, keepdims=True), approx=True)
        oh = jnp.einsum('bom,bmd->bod', p.astype(jnp.bfloat16), Vh,
                        preferred_element_type=jnp.float32)         # (B, O, dv)
        head_outs.append(oh)
    attn_heads = jnp.concatenate(head_outs, axis=-1).reshape(B * O, D_V)   # (B*O, D_V) f32

    attn = jnp.dot(attn_heads.astype(jnp.bfloat16), wo,
                   preferred_element_type=jnp.float32) + bo         # ONE O-projection

    q1 = jnp.broadcast_to(q0[None], (B, O, C_Q)).reshape(B * O, C_Q) + attn   # residual 1

    # ---- MLP block: LN -> Linear -> GELU -> Linear, residual ----
    hdn = _layernorm(q1, lnm_w, lnm_b)
    hdn = _gelu_exact(jnp.dot(hdn.astype(jnp.bfloat16), w1,
                              preferred_element_type=jnp.float32) + b1)
    q2 = q1 + jnp.dot(hdn.astype(jnp.bfloat16), w2,
                      preferred_element_type=jnp.float32) + b2      # residual 2

    # ---- output adapter: final Linear, lane-padded to 128 output columns ----
    out_ref[...] = jnp.dot(q2.astype(jnp.bfloat16), wc,
                           preferred_element_type=jnp.float32) + bc


def _full_spec(shape):
    nd = len(shape)
    return pl.BlockSpec(shape, lambda *_, nd=nd: (0,) * nd)


def perceiver_decoder(x, params):
    bf16 = jnp.bfloat16

    # ---- pack the small 1-D params into one lane-padded (16, 128) f32 block ----
    vec = jnp.zeros((VEC_ROWS, VEC_LANES), jnp.float32)
    rows = [(ROW_LNQ_W, params["lnq_w"]), (ROW_LNQ_B, params["lnq_b"]),
            (ROW_LNKV_W, params["lnkv_w"]), (ROW_LNKV_B, params["lnkv_b"]),
            (ROW_BQ, params["bq"]), (ROW_BO, params["bo"]),
            (ROW_LNM_W, params["lnm_w"]), (ROW_LNM_B, params["lnm_b"]),
            (ROW_B1, params["b1"]), (ROW_B2, params["b2"])]
    for r, v in rows:
        vec = vec.at[r, :v.shape[0]].set(v)
    vec = vec.at[ROW_BKV, :D_QK].set(params["bk"])
    vec = vec.at[ROW_BKV, D_QK:D_QK + D_V].set(params["bv"])
    vec = vec.at[ROW_BC, :N_CLS].set(params["bc"])

    # ---- pack all weights (pre-transposed to (in, out), bf16) into one lane-dense slab ----
    slab = jnp.zeros((SLAB_ROWS, SLAB_LANES), bf16)
    slab = slab.at[:, WQ_OFF:WQ_OFF + D_QK].set(params["wq"].T.astype(bf16))
    slab = slab.at[:, WKV_OFF:WKV_OFF + D_QK].set(params["wk"].T.astype(bf16))
    slab = slab.at[:, WKV_OFF + D_QK:WKV_OFF + D_QK + D_V].set(params["wv"].T.astype(bf16))
    slab = slab.at[:, WO_OFF:WO_OFF + C_Q].set(params["wo"].T.astype(bf16))
    slab = slab.at[:, W1_OFF:W1_OFF + HID].set(params["w1"].T.astype(bf16))
    slab = slab.at[:, W2_OFF:W2_OFF + C_Q].set(params["w2"].T.astype(bf16))
    slab = slab.at[:, WC_OFF:WC_OFF + N_CLS].set(params["wc"].T.astype(bf16))

    inputs = (x, params["query"], vec, slab)

    out = pl.pallas_call(
        decoder_kernel,
        out_shape=jax.ShapeDtypeStruct((B * O, N_CLS_PAD), jnp.float32),
        in_specs=[_full_spec(a.shape) for a in inputs],
        out_specs=_full_spec((B * O, N_CLS_PAD)),
    )(*inputs)
    return out.reshape(B, O, N_CLS_PAD)[..., :N_CLS]


# ---------------- deterministic parameter init (mirrors _init_parameters) ----------------
def init_params(key):
    ks = jax.random.split(key, 8)
    nrm = lambda k, shape: (INIT_SCALE * jax.random.normal(k, shape)).astype(jnp.float32)
    zeros = lambda shape: jnp.zeros(shape, jnp.float32)
    ones = lambda shape: jnp.ones(shape, jnp.float32)
    return {
        # learnable output query (OutputAdapter parameter)
        "query": nrm(ks[0], (O, C_Q)),
        # cross-attention layernorms
        "lnq_w": ones((C_Q,)), "lnq_b": zeros((C_Q,)),
        "lnkv_w": ones((C_LAT,)), "lnkv_b": zeros((C_LAT,)),
        # multi-head attention projections (nn.Linear: weight (out, in), bias zero)
        "wq": nrm(ks[1], (D_QK, C_Q)), "bq": zeros((D_QK,)),
        "wk": nrm(ks[2], (D_QK, C_LAT)), "bk": zeros((D_QK,)),
        "wv": nrm(ks[3], (D_V, C_LAT)), "bv": zeros((D_V,)),
        "wo": nrm(ks[4], (C_Q, D_V)), "bo": zeros((C_Q,)),
        # MLP block
        "lnm_w": ones((C_Q,)), "lnm_b": zeros((C_Q,)),
        "w1": nrm(ks[5], (HID, C_Q)), "b1": zeros((HID,)),
        "w2": nrm(ks[6], (C_Q, HID)), "b2": zeros((C_Q,)),
        # output adapter linear
        "wc": nrm(ks[7], (N_CLS, C_Q)), "bc": zeros((N_CLS,)),
    }


# ---------------- pure-JAX (f32) reference for verification ----------------
def reference(x, p):
    def ln(v, w, b):
        mu = v.mean(-1, keepdims=True)
        var = ((v - mu) ** 2).mean(-1, keepdims=True)
        return (v - mu) / jnp.sqrt(var + EPS) * w + b

    q0 = jnp.broadcast_to(p["query"], (B, O, C_Q))
    qn = ln(q0, p["lnq_w"], p["lnq_b"])
    kvn = ln(x, p["lnkv_w"], p["lnkv_b"])
    Q = qn @ p["wq"].T + p["bq"]
    K = kvn @ p["wk"].T + p["bk"]
    V = kvn @ p["wv"].T + p["bv"]
    Qh = Q.reshape(B, O, H, D_HQK)
    Kh = K.reshape(B, M, H, D_HQK)
    Vh = V.reshape(B, M, H, D_HV)
    s = jnp.einsum("bohd,bmhd->bhom", Qh, Kh) * (D_HQK ** -0.5)
    pa = jax.nn.softmax(s, axis=-1)
    oh = jnp.einsum("bhom,bmhd->bohd", pa, Vh).reshape(B, O, D_V)
    attn = oh @ p["wo"].T + p["bo"]
    q1 = q0 + attn
    h = ln(q1, p["lnm_w"], p["lnm_b"])
    h = jax.nn.gelu(h @ p["w1"].T + p["b1"], approximate=False)
    q2 = q1 + (h @ p["w2"].T + p["b2"])
    return q2 @ p["wc"].T + p["bc"]


if __name__ == "__main__":
    key = jax.random.PRNGKey(0)
    kx, kp = jax.random.split(key)
    x = jax.random.normal(kx, (B, M, C_LAT), dtype=jnp.float32)
    params = init_params(kp)

    out = perceiver_decoder(x, params)
    out = jax.block_until_ready(out)

    ref = reference(x, params)
    assert out.shape == (B, O, N_CLS)
    assert jnp.allclose(out, ref, atol=2e-3, rtol=2e-2), "mismatch vs reference"
    print("KERNEL_OK")
</pallas_src>

<mosaic_0001>
module attributes {stable_mosaic.version = 11 : i64} {
  func.func @decoder_kernel(%arg0: memref<2x8x32xf32, #tpu.memory_space<vmem>>, %arg1: memref<4x32xf32, #tpu.memory_space<vmem>>, %arg2: memref<16x128xf32, #tpu.memory_space<vmem>>, %arg3: memref<32x768xbf16, #tpu.memory_space<vmem>>, %arg4: memref<8x128xf32, #tpu.memory_space<vmem>>) attributes {dimension_semantics = [], scalar_prefetch = 0 : i64, scratch_operands = 0 : i64, tpu.core_type = #tpu.core_type<tc>} {
    %c0 = arith.constant 0 : index
    %c0_0 = arith.constant 0 : index
    %0 = vector.load %arg2[%c0, %c0_0] : memref<16x128xf32, #tpu.memory_space<vmem>>, vector<16x128xf32>
    %1 = vector.extract_strided_slice %0 {offsets = [0, 0], sizes = [1, 32], strides = [1, 1]} : vector<16x128xf32> to vector<1x32xf32>
    %2 = vector.shape_cast %1 : vector<1x32xf32> to vector<32xf32>
    %3 = vector.extract_strided_slice %0 {offsets = [1, 0], sizes = [1, 32], strides = [1, 1]} : vector<16x128xf32> to vector<1x32xf32>
    %4 = vector.shape_cast %3 : vector<1x32xf32> to vector<32xf32>
    %5 = vector.extract_strided_slice %0 {offsets = [2, 0], sizes = [1, 32], strides = [1, 1]} : vector<16x128xf32> to vector<1x32xf32>
    %6 = vector.shape_cast %5 : vector<1x32xf32> to vector<32xf32>
    %7 = vector.extract_strided_slice %0 {offsets = [3, 0], sizes = [1, 32], strides = [1, 1]} : vector<16x128xf32> to vector<1x32xf32>
    %8 = vector.shape_cast %7 : vector<1x32xf32> to vector<32xf32>
    %9 = vector.extract_strided_slice %0 {offsets = [4, 0], sizes = [1, 32], strides = [1, 1]} : vector<16x128xf32> to vector<1x32xf32>
    %10 = vector.shape_cast %9 : vector<1x32xf32> to vector<32xf32>
    %11 = vector.extract_strided_slice %0 {offsets = [5, 0], sizes = [1, 64], strides = [1, 1]} : vector<16x128xf32> to vector<1x64xf32>
    %12 = vector.shape_cast %11 : vector<1x64xf32> to vector<64xf32>
    %13 = vector.extract_strided_slice %0 {offsets = [6, 0], sizes = [1, 32], strides = [1, 1]} : vector<16x128xf32> to vector<1x32xf32>
    %14 = vector.shape_cast %13 : vector<1x32xf32> to vector<32xf32>
    %15 = vector.extract_strided_slice %0 {offsets = [7, 0], sizes = [1, 32], strides = [1, 1]} : vector<16x128xf32> to vector<1x32xf32>
    %16 = vector.shape_cast %15 : vector<1x32xf32> to vector<32xf32>
    %17 = vector.extract_strided_slice %0 {offsets = [8, 0], sizes = [1, 32], strides = [1, 1]} : vector<16x128xf32> to vector<1x32xf32>
    %18 = vector.shape_cast %17 : vector<1x32xf32> to vector<32xf32>
    %19 = vector.extract_strided_slice %0 {offsets = [9, 0], sizes = [1, 32], strides = [1, 1]} : vector<16x128xf32> to vector<1x32xf32>
    %20 = vector.shape_cast %19 : vector<1x32xf32> to vector<32xf32>
    %21 = vector.extract_strided_slice %0 {offsets = [10, 0], sizes = [1, 32], strides = [1, 1]} : vector<16x128xf32> to vector<1x32xf32>
    %22 = vector.shape_cast %21 : vector<1x32xf32> to vector<32xf32>
    %23 = vector.extract_strided_slice %0 {offsets = [11, 0], sizes = [1, 128], strides = [1, 1]} : vector<16x128xf32> to vector<1x128xf32>
    %24 = vector.shape_cast %23 : vector<1x128xf32> to vector<128xf32>
    %c0_1 = arith.constant 0 : index
    %c0_2 = arith.constant 0 : index
    %25 = vector.load %arg3[%c0_1, %c0_2] : memref<32x768xbf16, #tpu.memory_space<vmem>>, vector<32x768xbf16>
    %26 = vector.extract_strided_slice %25 {offsets = [0, 0], sizes = [32, 32], strides = [1, 1]} : vector<32x768xbf16> to vector<32x32xbf16>
    %27 = vector.extract_strided_slice %25 {offsets = [0, 128], sizes = [32, 64], strides = [1, 1]} : vector<32x768xbf16> to vector<32x64xbf16>
    %28 = vector.extract_strided_slice %25 {offsets = [0, 256], sizes = [32, 32], strides = [1, 1]} : vector<32x768xbf16> to vector<32x32xbf16>
    %29 = vector.extract_strided_slice %25 {offsets = [0, 384], sizes = [32, 32], strides = [1, 1]} : vector<32x768xbf16> to vector<32x32xbf16>
    %30 = vector.extract_strided_slice %25 {offsets = [0, 512], sizes = [32, 32], strides = [1, 1]} : vector<32x768xbf16> to vector<32x32xbf16>
    %31 = vector.extract_strided_slice %25 {offsets = [0, 640], sizes = [32, 128], strides = [1, 1]} : vector<32x768xbf16> to vector<32x128xbf16>
    %c0_3 = arith.constant 0 : index
    %c0_4 = arith.constant 0 : index
    %c0_5 = arith.constant 0 : index
    %32 = vector.load %arg0[%c0_3, %c0_4, %c0_5] : memref<2x8x32xf32, #tpu.memory_space<vmem>>, vector<2x8x32xf32>
    %33 = vector.shape_cast %32 : vector<2x8x32xf32> to vector<16x32xf32>
    %c0_6 = arith.constant 0 : index
    %c0_7 = arith.constant 0 : index
    %34 = vector.load %arg1[%c0_6, %c0_7] : memref<4x32xf32, #tpu.memory_space<vmem>>, vector<4x32xf32>
    %cst = arith.constant dense<0.000000e+00> : vector<4xf32>
    %35 = vector.multi_reduction <add>, %34, %cst [1] : vector<4x32xf32> to vector<4xf32>
    %36 = vector.shape_cast %35 : vector<4xf32> to vector<4x1xf32>
    %cst_8 = arith.constant 3.200000e+01 : f32
    %37 = vector.broadcast %cst_8 : f32 to vector<4x1xf32>
    %38 = arith.divf %36, %37 : vector<4x1xf32>
    %39 = vector.broadcast %38 : vector<4x1xf32> to vector<4x32xf32>
    %40 = arith.subf %34, %39 : vector<4x32xf32>
    %41 = arith.mulf %40, %40 : vector<4x32xf32>
    %cst_9 = arith.constant dense<0.000000e+00> : vector<4xf32>
    %42 = vector.multi_reduction <add>, %41, %cst_9 [1] : vector<4x32xf32> to vector<4xf32>
    %43 = vector.shape_cast %42 : vector<4xf32> to vector<4x1xf32>
    %cst_10 = arith.constant 3.200000e+01 : f32
    %44 = vector.broadcast %cst_10 : f32 to vector<4x1xf32>
    %45 = arith.divf %43, %44 : vector<4x1xf32>
    %46 = vector.broadcast %38 : vector<4x1xf32> to vector<4x32xf32>
    %47 = arith.subf %34, %46 : vector<4x32xf32>
    %cst_11 = arith.constant 9.99999974E-6 : f32
    %48 = vector.broadcast %cst_11 : f32 to vector<4x1xf32>
    %49 = arith.addf %45, %48 : vector<4x1xf32>
    %50 = math.rsqrt %49 : vector<4x1xf32>
    %51 = vector.broadcast %50 : vector<4x1xf32> to vector<4x32xf32>
    %52 = arith.mulf %47, %51 : vector<4x32xf32>
    %53 = vector.shape_cast %2 : vector<32xf32> to vector<1x32xf32>
    %54 = vector.broadcast %53 : vector<1x32xf32> to vector<4x32xf32>
    %55 = arith.mulf %52, %54 : vector<4x32xf32>
    %56 = vector.shape_cast %4 : vector<32xf32> to vector<1x32xf32>
    %57 = vector.broadcast %56 : vector<1x32xf32> to vector<4x32xf32>
    %58 = arith.addf %55, %57 : vector<4x32xf32>
    %59 = arith.truncf %58 : vector<4x32xf32> to vector<4x32xbf16>
    %cst_12 = arith.constant dense<0.000000e+00> : vector<4x32xf32>
    %60 = tpu.matmul %59, %26, %cst_12 {dimension_numbers = #tpu.dot_dimension_numbers<[1], [0], [0], [1], [0, 0, 1, 1], [], []>} : vector<4x32xbf16>, vector<32x32xbf16>, vector<4x32xf32> -> vector<4x32xf32>
    %61 = vector.shape_cast %10 : vector<32xf32> to vector<1x32xf32>
    %62 = vector.broadcast %61 : vector<1x32xf32> to vector<4x32xf32>
    %63 = arith.addf %60, %62 : vector<4x32xf32>
    %cst_13 = arith.constant 0.353553385 : f32
    %64 = vector.broadcast %cst_13 : f32 to vector<4x32xf32>
    %65 = arith.mulf %63, %64 : vector<4x32xf32>
    %66 = arith.truncf %65 : vector<4x32xf32> to vector<4x32xbf16>
    %67 = vector.shape_cast %66 : vector<4x32xbf16> to vector<1x4x32xbf16>
    %68 = vector.shape_cast %67 : vector<1x4x32xbf16> to vector<1x4x32xbf16>
    %69 = vector.broadcast %68 : vector<1x4x32xbf16> to vector<2x4x32xbf16>
    %cst_14 = arith.constant dense<0.000000e+00> : vector<16xf32>
    %70 = vector.multi_reduction <add>, %33, %cst_14 [1] : vector<16x32xf32> to vector<16xf32>
    %71 = vector.shape_cast %70 : vector<16xf32> to vector<16x1xf32>
    %cst_15 = arith.constant 3.200000e+01 : f32
    %72 = vector.broadcast %cst_15 : f32 to vector<16x1xf32>
    %73 = arith.divf %71, %72 : vector<16x1xf32>
    %74 = vector.broadcast %73 : vector<16x1xf32> to vector<16x32xf32>
    %75 = arith.subf %33, %74 : vector<16x32xf32>
    %76 = arith.mulf %75, %75 : vector<16x32xf32>
    %cst_16 = arith.constant dense<0.000000e+00> : vector<16xf32>
    %77 = vector.multi_reduction <add>, %76, %cst_16 [1] : vector<16x32xf32> to vector<16xf32>
    %78 = vector.shape_cast %77 : vector<16xf32> to vector<16x1xf32>
    %cst_17 = arith.constant 3.200000e+01 : f32
    %79 = vector.broadcast %cst_17 : f32 to vector<16x1xf32>
    %80 = arith.divf %78, %79 : vector<16x1xf32>
    %81 = vector.broadcast %73 : vector<16x1xf32> to vector<16x32xf32>
    %82 = arith.subf %33, %81 : vector<16x32xf32>
    %cst_18 = arith.constant 9.99999974E-6 : f32
    %83 = vector.broadcast %cst_18 : f32 to vector<16x1xf32>
    %84 = arith.addf %80, %83 : vector<16x1xf32>
    %85 = math.rsqrt %84 : vector<16x1xf32>
    %86 = vector.broadcast %85 : vector<16x1xf32> to vector<16x32xf32>
    %87 = arith.mulf %82, %86 : vector<16x32xf32>
    %88 = vector.shape_cast %6 : vector<32xf32> to vector<1x32xf32>
    %89 = vector.broadcast %88 : vector<1x32xf32> to vector<16x32xf32>
    %90 = arith.mulf %87, %89 : vector<16x32xf32>
    %91 = vector.shape_cast %8 : vector<32xf32> to vector<1x32xf32>
    %92 = vector.broadcast %91 : vector<1x32xf32> to vector<16x32xf32>
    %93 = arith.addf %90, %92 : vector<16x32xf32>
    %94 = arith.truncf %93 : vector<16x32xf32> to vector<16x32xbf16>
    %cst_19 = arith.constant dense<0.000000e+00> : vector<16x64xf32>
    %95 = tpu.matmul %94, %27, %cst_19 {dimension_numbers = #tpu.dot_dimension_numbers<[1], [0], [0], [1], [0, 0, 1, 1], [], []>} : vector<16x32xbf16>, vector<32x64xbf16>, vector<16x64xf32> -> vector<16x64xf32>
    %96 = vector.shape_cast %12 : vector<64xf32> to vector<1x64xf32>
    %97 = vector.broadcast %96 : vector<1x64xf32> to vector<16x64xf32>
    %98 = arith.addf %95, %97 : vector<16x64xf32>
    %99 = vector.extract_strided_slice %98 {offsets = [0, 0], sizes = [16, 32], strides = [1, 1]} : vector<16x64xf32> to vector<16x32xf32>
    %100 = vector.shape_cast %99 : vector<16x32xf32> to vector<2x8x32xf32>
    %101 = arith.truncf %100 : vector<2x8x32xf32> to vector<2x8x32xbf16>
    %102 = vector.extract_strided_slice %98 {offsets = [0, 32], sizes = [16, 32], strides = [1, 1]} : vector<16x64xf32> to vector<16x32xf32>
    %103 = vector.shape_cast %102 : vector<16x32xf32> to vector<2x8x32xf32>
    %104 = arith.truncf %103 : vector<2x8x32xf32> to vector<2x8x32xbf16>
    %105 = vector.extract_strided_slice %69 {offsets = [0, 0, 0], sizes = [2, 4, 8], strides = [1, 1, 1]} : vector<2x4x32xbf16> to vector<2x4x8xbf16>
    %106 = vector.extract_strided_slice %101 {offsets = [0, 0, 0], sizes = [2, 8, 8], strides = [1, 1, 1]} : vector<2x8x32xbf16> to vector<2x8x8xbf16>
    %107 = vector.extract_strided_slice %104 {offsets = [0, 0, 0], sizes = [2, 8, 8], strides = [1, 1, 1]} : vector<2x8x32xbf16> to vector<2x8x8xbf16>
    "tpu.trace_start"() <{level = 10 : i32, message = "bod,bmd->bom"}> : () -> ()
    %cst_20 = arith.constant dense<0.000000e+00> : vector<2x4x8xf32>
    %108 = tpu.matmul %105, %106, %cst_20 {dimension_numbers = #tpu.dot_dimension_numbers<[2], [2], [1], [1], [0, 0, 0, 1, 1, 1], [0], [0]>} : vector<2x4x8xbf16>, vector<2x8x8xbf16>, vector<2x4x8xf32> -> vector<2x4x8xf32>
    "tpu.trace_stop"() : () -> ()
    %cst_21 = arith.constant dense<0xFF800000> : vector<2x4xf32>
    %109 = vector.multi_reduction <maximumf>, %108, %cst_21 [2] : vector<2x4x8xf32> to vector<2x4xf32>
    %110 = vector.shape_cast %109 : vector<2x4xf32> to vector<2x4x1xf32>
    %111 = vector.broadcast %110 : vector<2x4x1xf32> to vector<2x4x8xf32>
    %112 = arith.subf %108, %111 : vector<2x4x8xf32>
    %113 = math.exp %112 : vector<2x4x8xf32>
    %cst_22 = arith.constant dense<0.000000e+00> : vector<2x4xf32>
    %114 = vector.multi_reduction <add>, %113, %cst_22 [2] : vector<2x4x8xf32> to vector<2x4xf32>
    %115 = vector.shape_cast %114 : vector<2x4xf32> to vector<2x4x1xf32>
    %116 = tpu.reciprocal %115 {approx = true} : vector<2x4x1xf32> -> vector<2x4x1xf32>
    %117 = vector.broadcast %116 : vector<2x4x1xf32> to vector<2x4x8xf32>
    %118 = arith.mulf %113, %117 : vector<2x4x8xf32>
    %119 = arith.truncf %118 : vector<2x4x8xf32> to vector<2x4x8xbf16>
    "tpu.trace_start"() <{level = 10 : i32, message = "bom,bmd->bod"}> : () -> ()
    %cst_23 = arith.constant dense<0.000000e+00> : vector<2x4x8xf32>
    %120 = tpu.matmul %119, %107, %cst_23 {dimension_numbers = #tpu.dot_dimension_numbers<[2], [1], [1], [2], [0, 0, 0, 1, 1, 2], [0], [0]>} : vector<2x4x8xbf16>, vector<2x8x8xbf16>, vector<2x4x8xf32> -> vector<2x4x8xf32>
    "tpu.trace_stop"() : () -> ()
    %121 = vector.extract_strided_slice %69 {offsets = [0, 0, 8], sizes = [2, 4, 8], strides = [1, 1, 1]} : vector<2x4x32xbf16> to vector<2x4x8xbf16>
    %122 = vector.extract_strided_slice %101 {offsets = [0, 0, 8], sizes = [2, 8, 8], strides = [1, 1, 1]} : vector<2x8x32xbf16> to vector<2x8x8xbf16>
    %123 = vector.extract_strided_slice %104 {offsets = [0, 0, 8], sizes = [2, 8, 8], strides = [1, 1, 1]} : vector<2x8x32xbf16> to vector<2x8x8xbf16>
    "tpu.trace_start"() <{level = 10 : i32, message = "bod,bmd->bom"}> : () -> ()
    %cst_24 = arith.constant dense<0.000000e+00> : vector<2x4x8xf32>
    %124 = tpu.matmul %121, %122, %cst_24 {dimension_numbers = #tpu.dot_dimension_numbers<[2], [2], [1], [1], [0, 0, 0, 1, 1, 1], [0], [0]>} : vector<2x4x8xbf16>, vector<2x8x8xbf16>, vector<2x4x8xf32> -> vector<2x4x8xf32>
    "tpu.trace_stop"() : () -> ()
    %cst_25 = arith.constant dense<0xFF800000> : vector<2x4xf32>
    %125 = vector.multi_reduction <maximumf>, %124, %cst_25 [2] : vector<2x4x8xf32> to vector<2x4xf32>
    %126 = vector.shape_cast %125 : vector<2x4xf32> to vector<2x4x1xf32>
    %127 = vector.broadcast %126 : vector<2x4x1xf32> to vector<2x4x8xf32>
    %128 = arith.subf %124, %127 : vector<2x4x8xf32>
    %129 = math.exp %128 : vector<2x4x8xf32>
    %cst_26 = arith.constant dense<0.000000e+00> : vector<2x4xf32>
    %130 = vector.multi_reduction <add>, %129, %cst_26 [2] : vector<2x4x8xf32> to vector<2x4xf32>
    %131 = vector.shape_cast %130 : vector<2x4xf32> to vector<2x4x1xf32>
    %132 = tpu.reciprocal %131 {approx = true} : vector<2x4x1xf32> -> vector<2x4x1xf32>
    %133 = vector.broadcast %132 : vector<2x4x1xf32> to vector<2x4x8xf32>
    %134 = arith.mulf %129, %133 : vector<2x4x8xf32>
    %135 = arith.truncf %134 : vector<2x4x8xf32> to vector<2x4x8xbf16>
    "tpu.trace_start"() <{level = 10 : i32, message = "bom,bmd->bod"}> : () -> ()
    %cst_27 = arith.constant dense<0.000000e+00> : vector<2x4x8xf32>
    %136 = tpu.matmul %135, %123, %cst_27 {dimension_numbers = #tpu.dot_dimension_numbers<[2], [1], [1], [2], [0, 0, 0, 1, 1, 2], [0], [0]>} : vector<2x4x8xbf16>, vector<2x8x8xbf16>, vector<2x4x8xf32> -> vector<2x4x8xf32>
    "tpu.trace_stop"() : () -> ()
    %137 = vector.extract_strided_slice %69 {offsets = [0, 0, 16], sizes = [2, 4, 8], strides = [1, 1, 1]} : vector<2x4x32xbf16> to vector<2x4x8xbf16>
    %138 = vector.extract_strided_slice %101 {offsets = [0, 0, 16], sizes = [2, 8, 8], strides = [1, 1, 1]} : vector<2x8x32xbf16> to vector<2x8x8xbf16>
    %139 = vector.extract_strided_slice %104 {offsets = [0, 0, 16], sizes = [2, 8, 8], strides = [1, 1, 1]} : vector<2x8x32xbf16> to vector<2x8x8xbf16>
    "tpu.trace_start"() <{level = 10 : i32, message = "bod,bmd->bom"}> : () -> ()
    %cst_28 = arith.constant dense<0.000000e+00> : vector<2x4x8xf32>
    %140 = tpu.matmul %137, %138, %cst_28 {dimension_numbers = #tpu.dot_dimension_numbers<[2], [2], [1], [1], [0, 0, 0, 1, 1, 1], [0], [0]>} : vector<2x4x8xbf16>, vector<2x8x8xbf16>, vector<2x4x8xf32> -> vector<2x4x8xf32>
    "tpu.trace_stop"() : () -> ()
    %cst_29 = arith.constant dense<0xFF800000> : vector<2x4xf32>
    %141 = vector.multi_reduction <maximumf>, %140, %cst_29 [2] : vector<2x4x8xf32> to vector<2x4xf32>
    %142 = vector.shape_cast %141 : vector<2x4xf32> to vector<2x4x1xf32>
    %143 = vector.broadcast %142 : vector<2x4x1xf32> to vector<2x4x8xf32>
    %144 = arith.subf %140, %143 : vector<2x4x8xf32>
    %145 = math.exp %144 : vector<2x4x8xf32>
    %cst_30 = arith.constant dense<0.000000e+00> : vector<2x4xf32>
    %146 = vector.multi_reduction <add>, %145, %cst_30 [2] : vector<2x4x8xf32> to vector<2x4xf32>
    %147 = vector.shape_cast %146 : vector<2x4xf32> to vector<2x4x1xf32>
    %148 = tpu.reciprocal %147 {approx = true} : vector<2x4x1xf32> -> vector<2x4x1xf32>
    %149 = vector.broadcast %148 : vector<2x4x1xf32> to vector<2x4x8xf32>
    %150 = arith.mulf %145, %149 : vector<2x4x8xf32>
    %151 = arith.truncf %150 : vector<2x4x8xf32> to vector<2x4x8xbf16>
    "tpu.trace_start"() <{level = 10 : i32, message = "bom,bmd->bod"}> : () -> ()
    %cst_31 = arith.constant dense<0.000000e+00> : vector<2x4x8xf32>
    %152 = tpu.matmul %151, %139, %cst_31 {dimension_numbers = #tpu.dot_dimension_numbers<[2], [1], [1], [2], [0, 0, 0, 1, 1, 2], [0], [0]>} : vector<2x4x8xbf16>, vector<2x8x8xbf16>, vector<2x4x8xf32> -> vector<2x4x8xf32>
    "tpu.trace_stop"() : () -> ()
    %153 = vector.extract_strided_slice %69 {offsets = [0, 0, 24], sizes = [2, 4, 8], strides = [1, 1, 1]} : vector<2x4x32xbf16> to vector<2x4x8xbf16>
    %154 = vector.extract_strided_slice %101 {offsets = [0, 0, 24], sizes = [2, 8, 8], strides = [1, 1, 1]} : vector<2x8x32xbf16> to vector<2x8x8xbf16>
    %155 = vector.extract_strided_slice %104 {offsets = [0, 0, 24], sizes = [2, 8, 8], strides = [1, 1, 1]} : vector<2x8x32xbf16> to vector<2x8x8xbf16>
    "tpu.trace_start"() <{level = 10 : i32, message = "bod,bmd->bom"}> : () -> ()
    %cst_32 = arith.constant dense<0.000000e+00> : vector<2x4x8xf32>
    %156 = tpu.matmul %153, %154, %cst_32 {dimension_numbers = #tpu.dot_dimension_numbers<[2], [2], [1], [1], [0, 0, 0, 1, 1, 1], [0], [0]>} : vector<2x4x8xbf16>, vector<2x8x8xbf16>, vector<2x4x8xf32> -> vector<2x4x8xf32>
    "tpu.trace_stop"() : () -> ()
    %cst_33 = arith.constant dense<0xFF800000> : vector<2x4xf32>
    %157 = vector.multi_reduction <maximumf>, %156, %cst_33 [2] : vector<2x4x8xf32> to vector<2x4xf32>
    %158 = vector.shape_cast %157 : vector<2x4xf32> to vector<2x4x1xf32>
    %159 = vector.broadcast %158 : vector<2x4x1xf32> to vector<2x4x8xf32>
    %160 = arith.subf %156, %159 : vector<2x4x8xf32>
    %161 = math.exp %160 : vector<2x4x8xf32>
    %cst_34 = arith.constant dense<0.000000e+00> : vector<2x4xf32>
    %162 = vector.multi_reduction <add>, %161, %cst_34 [2] : vector<2x4x8xf32> to vector<2x4xf32>
    %163 = vector.shape_cast %162 : vector<2x4xf32> to vector<2x4x1xf32>
    %164 = tpu.reciprocal %163 {approx = true} : vector<2x4x1xf32> -> vector<2x4x1xf32>
    %165 = vector.broadcast %164 : vector<2x4x1xf32> to vector<2x4x8xf32>
    %166 = arith.mulf %161, %165 : vector<2x4x8xf32>
    %167 = arith.truncf %166 : vector<2x4x8xf32> to vector<2x4x8xbf16>
    "tpu.trace_start"() <{level = 10 : i32, message = "bom,bmd->bod"}> : () -> ()
    %cst_35 = arith.constant dense<0.000000e+00> : vector<2x4x8xf32>
    %168 = tpu.matmul %167, %155, %cst_35 {dimension_numbers = #tpu.dot_dimension_numbers<[2], [1], [1], [2], [0, 0, 0, 1, 1, 2], [0], [0]>} : vector<2x4x8xbf16>, vector<2x8x8xbf16>, vector<2x4x8xf32> -> vector<2x4x8xf32>
    "tpu.trace_stop"() : () -> ()
    %169 = tpu.concatenate %120, %136, %152, %168 in 2 : vector<2x4x8xf32>, vector<2x4x8xf32>, vector<2x4x8xf32>, vector<2x4x8xf32> -> vector<2x4x32xf32>
    %170 = vector.shape_cast %169 : vector<2x4x32xf32> to vector<8x32xf32>
    %171 = arith.truncf %170 : vector<8x32xf32> to vector<8x32xbf16>
    %cst_36 = arith.constant dense<0.000000e+00> : vector<8x32xf32>
    %172 = tpu.matmul %171, %28, %cst_36 {dimension_numbers = #tpu.dot_dimension_numbers<[1], [0], [0], [1], [0, 0, 1, 1], [], []>} : vector<8x32xbf16>, vector<32x32xbf16>, vector<8x32xf32> -> vector<8x32xf32>
    %173 = vector.shape_cast %14 : vector<32xf32> to vector<1x32xf32>
    %174 = vector.broadcast %173 : vector<1x32xf32> to vector<8x32xf32>
    %175 = arith.addf %172, %174 : vector<8x32xf32>
    %176 = vector.shape_cast %34 : vector<4x32xf32> to vector<1x4x32xf32>
    %177 = vector.shape_cast %176 : vector<1x4x32xf32> to vector<1x4x32xf32>
    %178 = vector.broadcast %177 : vector<1x4x32xf32> to vector<2x4x32xf32>
    %179 = vector.shape_cast %178 : vector<2x4x32xf32> to vector<8x32xf32>
    %180 = arith.addf %179, %175 : vector<8x32xf32>
    %cst_37 = arith.constant dense<0.000000e+00> : vector<8xf32>
    %181 = vector.multi_reduction <add>, %180, %cst_37 [1] : vector<8x32xf32> to vector<8xf32>
    %182 = vector.shape_cast %181 : vector<8xf32> to vector<8x1xf32>
    %cst_38 = arith.constant 3.200000e+01 : f32
    %183 = vector.broadcast %cst_38 : f32 to vector<8x1xf32>
    %184 = arith.divf %182, %183 : vector<8x1xf32>
    %185 = vector.broadcast %184 : vector<8x1xf32> to vector<8x32xf32>
    %186 = arith.subf %180, %185 : vector<8x32xf32>
    %187 = arith.mulf %186, %186 : vector<8x32xf32>
    %cst_39 = arith.constant dense<0.000000e+00> : vector<8xf32>
    %188 = vector.multi_reduction <add>, %187, %cst_39 [1] : vector<8x32xf32> to vector<8xf32>
    %189 = vector.shape_cast %188 : vector<8xf32> to vector<8x1xf32>
    %cst_40 = arith.constant 3.200000e+01 : f32
    %190 = vector.broadcast %cst_40 : f32 to vector<8x1xf32>
    %191 = arith.divf %189, %190 : vector<8x1xf32>
    %192 = vector.broadcast %184 : vector<8x1xf32> to vector<8x32xf32>
    %193 = arith.subf %180, %192 : vector<8x32xf32>
    %cst_41 = arith.constant 9.99999974E-6 : f32
    %194 = vector.broadcast %cst_41 : f32 to vector<8x1xf32>
    %195 = arith.addf %191, %194 : vector<8x1xf32>
    %196 = math.rsqrt %195 : vector<8x1xf32>
    %197 = vector.broadcast %196 : vector<8x1xf32> to vector<8x32xf32>
    %198 = arith.mulf %193, %197 : vector<8x32xf32>
    %199 = vector.shape_cast %16 : vector<32xf32> to vector<1x32xf32>
    %200 = vector.broadcast %199 : vector<1x32xf32> to vector<8x32xf32>
    %201 = arith.mulf %198, %200 : vector<8x32xf32>
    %202 = vector.shape_cast %18 : vector<32xf32> to vector<1x32xf32>
    %203 = vector.broadcast %202 : vector<1x32xf32> to vector<8x32xf32>
    %204 = arith.addf %201, %203 : vector<8x32xf32>
    %205 = arith.truncf %204 : vector<8x32xf32> to vector<8x32xbf16>
    %cst_42 = arith.constant dense<0.000000e+00> : vector<8x32xf32>
    %206 = tpu.matmul %205, %29, %cst_42 {dimension_numbers = #tpu.dot_dimension_numbers<[1], [0], [0], [1], [0, 0, 1, 1], [], []>} : vector<8x32xbf16>, vector<32x32xbf16>, vector<8x32xf32> -> vector<8x32xf32>
    %207 = vector.shape_cast %20 : vector<32xf32> to vector<1x32xf32>
    %208 = vector.broadcast %207 : vector<1x32xf32> to vector<8x32xf32>
    %209 = arith.addf %206, %208 : vector<8x32xf32>
    %cst_43 = arith.constant 5.000000e-01 : f32
    %210 = vector.broadcast %cst_43 : f32 to vector<8x32xf32>
    %211 = arith.mulf %210, %209 : vector<8x32xf32>
    %cst_44 = arith.constant 0.707106769 : f32
    %212 = vector.broadcast %cst_44 : f32 to vector<8x32xf32>
    %213 = arith.mulf %209, %212 : vector<8x32xf32>
    %214 = math.erf %213 : vector<8x32xf32>
    %cst_45 = arith.constant 1.000000e+00 : f32
    %215 = vector.broadcast %cst_45 : f32 to vector<8x32xf32>
    %216 = arith.addf %215, %214 : vector<8x32xf32>
    %217 = arith.mulf %211, %216 : vector<8x32xf32>
    %218 = arith.truncf %217 : vector<8x32xf32> to vector<8x32xbf16>
    %cst_46 = arith.constant dense<0.000000e+00> : vector<8x32xf32>
    %219 = tpu.matmul %218, %30, %cst_46 {dimension_numbers = #tpu.dot_dimension_numbers<[1], [0], [0], [1], [0, 0, 1, 1], [], []>} : vector<8x32xbf16>, vector<32x32xbf16>, vector<8x32xf32> -> vector<8x32xf32>
    %220 = arith.addf %180, %219 : vector<8x32xf32>
    %221 = vector.shape_cast %22 : vector<32xf32> to vector<1x32xf32>
    %222 = vector.broadcast %221 : vector<1x32xf32> to vector<8x32xf32>
    %223 = arith.addf %220, %222 : vector<8x32xf32>
    %224 = arith.truncf %223 : vector<8x32xf32> to vector<8x32xbf16>
    %cst_47 = arith.constant dense<0.000000e+00> : vector<8x128xf32>
    %225 = tpu.matmul %224, %31, %cst_47 {dimension_numbers = #tpu.dot_dimension_numbers<[1], [0], [0], [1], [0, 0, 1, 1], [], []>} : vector<8x32xbf16>, vector<32x128xbf16>, vector<8x128xf32> -> vector<8x128xf32>
    %226 = vector.shape_cast %24 : vector<128xf32> to vector<1x128xf32>
    %227 = vector.broadcast %226 : vector<1x128xf32> to vector<8x128xf32>
    %228 = arith.addf %225, %227 : vector<8x128xf32>
    %c0_48 = arith.constant 0 : index
    %c0_49 = arith.constant 0 : index
    %229 = vector.load %arg4[%c0_48, %c0_49] : memref<8x128xf32, #tpu.memory_space<vmem>>, vector<8x128xf32>
    tpu.vector_store %arg4[%c0_48, %c0_49], %228 {strides = array<i32>} : memref<8x128xf32, #tpu.memory_space<vmem>>, vector<8x128xf32>,
    return
  }
}

</mosaic_0001>

<bundles_post_ra>
// kernel: tpu_custom_call.1
= control target key start
LH: loop header
LB: loop body
LE: loop exit
PB: predicated region body
PF: predicated region fallthrough
CT: control target
= control target key end

     0   :  { %9 = vsyncpa [#allocation3], 0  ;;  %s2238_s0 = inlined_call_operand.hbm [shape: f32[2,8,32], index: 0, kind: input, shape index: {}]   ;;  %s2239_s1 = inlined_call_operand.hbm [shape: f32[4,32], index: 1, kind: input, shape index: {}]   ;;  %s2240_s2 = inlined_call_operand.hbm [shape: f32[16,128], index: 2, kind: input, shape index: {}]   ;;  %s2241_s3 = inlined_call_operand.hbm [shape: bf16[32,768], index: 3, kind: input, shape index: {}]   ;;  %s2242_s4 = inlined_call_operand.hbm [shape: f32[8,128], index: 4, kind: output, shape index: {}]  }
   0x1   :  { %10 = vsyncpa [#allocation6], 0 }
   0x2   :  { %11 = vsyncpa [#allocation9], 0 }
   0x3   :  { %12 = vsyncpa [#allocation4], 0  ;;  %s1941_s15 = smov [#allocation5]   ;;  %s1942_s17 = smov [#allocation2]  }
   0x4   :  { %s31_s16 = sshll.u32 %s1941_s15, 4  ;;  %s18_s18 = sshll.u32 %s1942_s17, 4  ;;  %s32_s16 = int_to_ptr.vmem [resolvable:$true] %s31_s16  ;;  %s19_s18 = int_to_ptr.vmem [resolvable:$true] %s18_s18 }
   0x5   :  { %s1841_s19 = scalar_lea.vmem %s32_s16, 64  ;;  %p1846_p1 = scmp.lt.s32.totalorder %s32_s16, %s32_s16 }
   0x6   :  { %p1842_p0 = scmp.ne.s32.totalorder %s32_s16, %s1841_s19  ;;  %p1847_p2 = scmp.lt.s32.totalorder %s1841_s19, %s1841_s19 }
   0x8   :  { %p1848_p3 = por %p1847_p2, %p1846_p1 }
   0xa   :  { %p1849_p4 = pnand %p1848_p3, %p1842_p0 }
   0xc   :  { %1852 = shalt.err (!%p1849_p4)
}
   0xd   :  { %34 = dma.hbm_to_vmem [thread:$0]  %s2239_s1, 64, %s32_s16, [#allocation6]  }
   0xe   :  { %s1861_s22 = scalar_lea.vmem %s19_s18, 256  ;;  %p1866_p6 = scmp.lt.s32.totalorder %s19_s18, %s19_s18 }
   0xf   :  { %p1862_p5 = scmp.ne.s32.totalorder %s19_s18, %s1861_s22  ;;  %p1867_p7 = scmp.lt.s32.totalorder %s1861_s22, %s1861_s22 }
  0x11   :  { %p1868_p8 = por %p1867_p7, %p1866_p6 }
  0x13   :  { %p1869_p9 = pnand %p1868_p8, %p1862_p5 }
  0x15   :  { %1872 = shalt.err (!%p1869_p9)
}
  0x16   :  { %s1943_s23 = smov 128   ;;  %s1944_s24 = smov 8  }
  0x17   :  { %24 = dma.hbm_to_vmem [thread:$0]  %s2238_s0, 256, %s19_s18, [#allocation3], %s1943_s23, %s1943_s23, %s1944_s24  }
  0x18   :  { %s1945_s27 = smov [#allocation7]   ;;  %s1946_s29 = smov [#allocation8]  }
  0x19   :  { %s40_s28 = sshll.u32 %s1945_s27, 4  ;;  %s52_s30 = sshll.u32 %s1946_s29, 4  ;;  %s41_s28 = int_to_ptr.vmem [resolvable:$true] %s40_s28  ;;  %s53_s30 = int_to_ptr.vmem [resolvable:$true] %s52_s30 }
  0x1a   :  { %s1881_s1 = scalar_lea.vmem %s41_s28, 256  ;;  %p1886_p11 = scmp.lt.s32.totalorder %s41_s28, %s41_s28 }
  0x1b   :  { %p1882_p10 = scmp.ne.s32.totalorder %s41_s28, %s1881_s1  ;;  %p1887_p12 = scmp.lt.s32.totalorder %s1881_s1, %s1881_s1 }
  0x1d   :  { %p1888_p13 = por %p1887_p12, %p1886_p11 }
  0x1f   :  { %p1889_p0 = pnand %p1888_p13, %p1882_p10 }
  0x21   :  { %1892 = shalt.err (!%p1889_p0)
}
  0x22   :  { %46 = dma.hbm_to_vmem [thread:$0]  %s2240_s2, 256, %s41_s28, [#allocation6], %s1943_s23, %s1943_s23, %s1944_s24  }
  0x23   :  { %s1901_s7 = scalar_lea.vmem %s53_s30, 1536  ;;  %p1906_p2 = scmp.lt.s32.totalorder %s53_s30, %s53_s30 }
  0x24   :  { %p1902_p1 = scmp.ne.s32.totalorder %s53_s30, %s1901_s7  ;;  %p1907_p3 = scmp.lt.s32.totalorder %s1901_s7, %s1901_s7 }
  0x26   :  { %p1908_p4 = por %p1907_p3, %p1906_p2 }
  0x28   :  { %p1909_p5 = pnand %p1908_p4, %p1902_p1 }
  0x2a   :  { %1912 = shalt.err (!%p1909_p5)
}
  0x2b   :  { %s1947_s0 = smov 384   ;;  %s1948_s8 = smov 24  }
  0x2c   :  { %58 = dma.hbm_to_vmem [thread:$0]  %s2241_s3, 1536, %s53_s30, [#allocation9], %s1947_s0, %s1947_s0, %s1948_s8  }
  0x2d   :  { %1933 = dma.done.wait [#allocation3], 256  }
  0x2e   :  { %1934 = vsyncadd [#allocation3], 4294967040 }
  0x2f   :  { %1935 = dma.done.wait [#allocation6], 320  }
  0x30   :  { %1936 = vsyncadd [#allocation6], 4294966976 }
  0x31   :  { %1937 = dma.done.wait [#allocation9], 1536  }
  0x32   :  { %1938 = vsyncadd [#allocation9], 4294965760  ;;  %vm131_vm0 = vcmask 261120   ;;  %vm89_vm1 = vcmask 257024   ;;  %v86_v0 = vld [vmem:[#allocation2] sm:$0xff]  ;;  %v87_v2 = vld [vmem:[#allocation2 + $0x8] sm:$0xff]  ;;  %v104_v35 = vlaneseq }
  0x33   :  { %v2002_v1 = vld [vmem:[#allocation5] sm:$0xf]  ;;  %v177_v3 = vsel %vm131_vm0, %v86_v0, 0.0  ;;  %v180_v5 = vsel %vm131_vm0, %v87_v2, 0.0  ;;  %v1773_v21 = vld [vmem:[#allocation8 + $0x30] ss:$24 sps:$4 sm:$0xff]  }
  0x34   :  { %v90_v4 = vsel %vm89_vm1, %v2002_v1, 0.0  ;;  %178 = vadd.xlane.f32.xlu0 %v177_v3  ;;  %v1775_v22 = vld [vmem:[#allocation8 + $0x34] ss:$24 sps:$4 sm:$0xff]   ;;  %v1949_v23 = vmov 0.0   ;;  %v1776_v24 = vld [vmem:[#allocation8] ss:$24 sps:$4 sm:$0xff]  }
  0x35   :  { %91 = vadd.xlane.f32.xlu1 %v90_v4  ;;  %1608 = vmatprep.subr.bf16.mxu0 %v1949_v23  ;;  %v1778_v25 = vld [vmem:[#allocation8 + $0x4] ss:$24 sps:$4 sm:$0xff]   ;;  %vm1950_vm2 = vmmov 0   ;;  %v2022_v36 = vshrl.u32 %v104_v35, 7  ;;  %v2025_v38 = vld [vmem:[#allocation7] sm:$0xff]  ;;  %vm274_vm3 = vcmask 64512  }
  0x36   :  { %1616 = vmatprep.subr.bf16.mxu1 %v1949_v23  ;;  %1609 = vmatpush3.bf16.msra.mxu0 %v1773_v21  ;;  %vm364_vm4 = vcmask 60416   ;;  %s1951_s2 = smov 96   ;;  %s1952_s3 = smov 120   ;;  %vm395_vm5 = vcmask 1043456   ;;  %vm1160_vm6 = vcmask 130048   ;;  %vm1163_vm7 = vcmask 195584  }
  0x37   :  { %1617 = vmatpush3.bf16.msra.mxu1 %v1775_v22  ;;  %1610 = vmatprep.subr.bf16.mxu0 %v1949_v23  ;;  %v205_v37 = vsub.s32 2, %v2022_v36  ;;  %v106_v39 = vsub.s32 0, %v2022_v36  ;;  %v111_v41 = vsub.s32 1, %v2022_v36  ;;  %v211_v44 = vsub.s32 3, %v2022_v36  ;;  %s1953_s11 = smov 88   ;;  %s1954_s12 = smov 112  }
  0x38   :  { %181 = vadd.xlane.f32.xlu0 %v180_v5  ;;  %1618 = vmatprep.subr.bf16.mxu1 %v1949_v23  ;;  %v218_v60 = vsub.s32 5, %v2022_v36  ;;  %v117_v61 = vsub.s32 4, %v2022_v36  ;;  %s1955_s13 = smov 80   ;;  %s1956_s14 = smov 104  }
  0x39   :  { %1612 = vmatprep.mubr.msk.bf16.mxu0 %vm1950_vm2, %v1949_v23  ;;  %1620 = vmatprep.mubr.msk.bf16.mxu1 %vm1950_vm2, %v1949_v23  ;;  %v206_v43 = vrot.slane %v2025_v38, %v205_v37  ;;  %v107_v45 = vrot.slane %v2025_v38, %v106_v39  ;;  %v112_v49 = vrot.slane %v2025_v38, %v111_v41  ;;  %s1957_s15 = smov 72   ;;  %s1958_s16 = smov 16  }
  0x3a   :  { %1611 = vmatpush3.bf16.msra.mxu0 %v1776_v24  ;;  %v212_v52 = vrot.slane %v2025_v38, %v211_v44  ;;  %v219_v62 = vrot.slane %v2025_v38, %v218_v60  ;;  %v118_v63 = vrot.slane %v2025_v38, %v117_v61  ;;  %s1961_s17 = smov [#allocation10]  }
  0x3b   :  { %1619 = vmatpush3.bf16.msra.mxu1 %v1778_v25  ;;  %1624 = vmatprep.subr.bf16.mxu0 %v1949_v23  ;;  %s1513_s18 = sshll.u32 %s1961_s17, 4  ;;  %s1514_s18 = int_to_ptr.vmem [resolvable:$true] %s1513_s18 }
  0x3c   :  { %1630 = vmatprep.subr.bf16.mxu1 %v1949_v23  ;;  %s1913_s19 = scalar_lea.vmem %s1514_s18, 128  ;;  %p1918_p7 = scmp.lt.s32.totalorder %s1514_s18, %s1514_s18 }
  0x3d   :  { %p1914_p6 = scmp.ne.s32.totalorder %s1514_s18, %s1913_s19  ;;  %p1919_p8 = scmp.lt.s32.totalorder %s1913_s19, %s1913_s19 }
  0x3f   :  { %p1920_p9 = por %p1919_p8, %p1918_p7 }
  0x41   :  { %p1921_p10 = pnand %p1920_p9, %p1914_p6 }
  0xbd   :  { %v179_v6 = vpop.xlane.xlu0 %178 }
  0xbe   :  { %v92_v7 = vpop.xlane.xlu1 %91  ;;  %v183_v8 = vmul.f32 0.03125, %v179_v6 }
  0xbf   :  { %v94_v9 = vmul.f32 0.03125, %v92_v7 }
  0xc0   :  { %v185_v10 = vsub.f32 %v86_v0, %v183_v8 }
  0xc1   :  { %v95_v11 = vsub.f32 %v2002_v1, %v94_v9  ;;  %v182_v12 = vpop.xlane.xlu0 %181 }
  0xc2   :  { %v184_v13 = vmul.f32 0.03125, %v182_v12  ;;  %v187_v14 = vmul.f32 %v185_v10, %v185_v10 }
  0xc3   :  { %v96_v15 = vmul.f32 %v95_v11, %v95_v11 }
  0xc4   :  { %v186_v16 = vsub.f32 %v87_v2, %v184_v13  ;;  %v189_v17 = vsel %vm131_vm0, %v187_v14, 0.0 }
  0xc5   :  { %190 = vadd.xlane.f32.xlu1 %v189_v17  ;;  %v97_v18 = vsel %vm89_vm1, %v96_v15, 0.0 }
  0xc6   :  { %v188_v19 = vmul.f32 %v186_v16, %v186_v16 }
  0xc8   :  { %v192_v20 = vsel %vm131_vm0, %v188_v19, 0.0 }
  0xc9   :  { %98 = vadd.xlane.f32.xlu1 %v97_v18  ;;  %193 = vadd.xlane.f32.xlu0 %v192_v20 }
 0x14e   :  { %v191_v26 = vpop.xlane.xlu1 %190 }
 0x14f   :  { %v195_v27 = vmul.f32 0.03125, %v191_v26 }
 0x151   :  { %v197_v28 = vadd.f32 1e-05, %v195_v27 }
 0x152   :  { %v99_v29 = vpop.xlane.xlu1 %98  ;;  %v194_v30 = vpop.xlane.xlu0 %193 }
 0x153   :  { %1791 = vrsqrt.f32 %v197_v28  ;;  %v100_v31 = vmul.f32 0.03125, %v99_v29  ;;  %v196_v32 = vmul.f32 0.03125, %v194_v30 }
 0x155   :  { %v101_v33 = vadd.f32 1e-05, %v100_v31  ;;  %v198_v34 = vadd.f32 1e-05, %v196_v32 }
 0x157   :  { %1793 = vrsqrt.f32 %v101_v33 }
 0x158   :  { %1795 = vrsqrt.f32 %v198_v34 }
 0x160   :  { %v1792_v40 = vpop.eup %1791 }
 0x161   :  { %v201_v42 = vmul.f32 %v1792_v40, %v185_v10 }
 0x163   :  { %v207_v51 = vmul.f32 %v206_v43, %v201_v42 }
 0x164   :  { %v1794_v46 = vpop.eup %1793 }
 0x165   :  { %v1796_v47 = vpop.eup %1795  ;;  %v103_v48 = vmul.f32 %v1794_v46, %v95_v11  ;;  %v213_v56 = vadd.f32 %v212_v52, %v207_v51 }
 0x166   :  { %v202_v50 = vmul.f32 %v1796_v47, %v186_v16 }
 0x167   :  { %v108_v53 = vmul.f32 %v107_v45, %v103_v48 }
 0x168   :  { %v208_v54 = vmul.f32 %v206_v43, %v202_v50 }
 0x169   :  { %v113_v55 = vadd.f32 %v112_v49, %v108_v53 }
 0x16a   :  { %v214_v57 = vadd.f32 %v212_v52, %v208_v54 }
 0x16b   :  { %v114_v58 = vpack.c.bf16 %v113_v55, %v113_v55 }
 0x16c   :  { %v215_v59 = vpack.c.bf16 %v214_v57, %v213_v56 }
 0x16d   :  { %1613 = vmatmul.mubr.msk.bf16.vlgmr.msra.gmra.mxu0 %vm131_vm0, %v114_v58 }
 0x16e   :  { %1621 = vmatmul.mubr.msk.bf16.vlgmr.msra.gmra.mxu1 %vm131_vm0, %v215_v59  ;;  %1626 = vmatprep.mubr.msk.bf16.mxu0 %vm1950_vm2, %v1949_v23 }
 0x16f   :  { %1632 = vmatprep.mubr.msk.bf16.mxu1 %vm1950_vm2, %v1949_v23 }
 0x22d   :  { %v169_v0 = vpop.f32.mrf.mxu0 }
 0x22e   :  { %v265_v2 = vpop.f32.mrf.mxu1  ;;  %v170_v6 = vadd.f32 %v169_v0, %v118_v63 }
 0x22f   :  { %v266_v3 = vadd.f32 %v265_v2, %v219_v62  ;;  %v1614_v4 = vpop.f32.mrf.mxu0 }
 0x230   :  { %v1622_v5 = vpop.f32.mrf.mxu1  ;;  %v175_v14 = vmul.f32 0.35355338, %v170_v6 }
 0x231   :  { %v2052_v7 = vpack.c.bf16 %v266_v3, %v266_v3  ;;  %v172_v8 = vpop.f32.mrf.mxu0 }
 0x232   :  { %v268_v9 = vpop.f32.mrf.mxu1  ;;  %v2061_v17 = vpack.c.bf16 %v175_v14, %v175_v14 }
 0x233   :  { %v269_v10 = vadd.f32 %v268_v9, %v219_v62  ;;  %v1615_v11 = vpop.f32.mrf.mxu0  ;;  %v279_v12 = vsel %vm274_vm3, %v2052_v7, 0 }
 0x234   :  { %v1623_v13 = vpop.f32.mrf.mxu1  ;;  %1625 = vmatpush3.bf16.xpose.msra.mxu0 %v279_v12 }
 0x235   :  { %v2056_v15 = vpack.c.bf16 %v269_v10, %v269_v10  ;;  %1636 = vmatprep.subr.bf16.mxu0 %v1949_v23 }
 0x237   :  { %v322_v16 = vsel %vm274_vm3, %v2056_v15, 0 }
 0x238   :  { %1631 = vmatpush3.bf16.xpose.msra.mxu1 %v322_v16 }
 0x239   :  { %1642 = vmatprep.subr.bf16.mxu1 %v1949_v23 }
 0x23b   :  { %1627 = vmatmul.mubr.msk.bf16.vlgmr.msra.gmra.mxu0 %vm274_vm3, %v2061_v17 }
 0x23c   :  { %1638 = vmatprep.mubr.msk.bf16.mxu0 %vm1950_vm2, %v1949_v23 }
 0x23f   :  { %1633 = vmatmul.mubr.msk.bf16.vlgmr.msra.gmra.mxu1 %vm274_vm3, %v2061_v17 }
 0x240   :  { %1644 = vmatprep.mubr.msk.bf16.mxu1 %vm1950_vm2, %v1949_v23 }
 0x2fb   :  { %v315_v18 = vpop.f32.mrf.mxu0 }
 0x2fc   :  { %v365_v19 = vsel %vm364_vm4, %v315_v18, -inf }
 0x2fd   :  { %366 = vmax.xlane.f32.xlu0 %v365_v19  ;;  %v1628_v20 = vpop.f32.mrf.mxu0 }
 0x2ff   :  { %v318_v21 = vpop.f32.mrf.mxu0  ;;  %v358_v22 = vpop.f32.mrf.mxu1 }
 0x300   :  { %v368_v24 = vsel %vm364_vm4, %v358_v22, -inf }
 0x301   :  { %369 = vmax.xlane.f32.xlu1 %v368_v24  ;;  %v1629_v25 = vpop.f32.mrf.mxu0  ;;  %v1634_v26 = vpop.f32.mrf.mxu1 }
 0x303   :  { %v361_v27 = vpop.f32.mrf.mxu1 }
 0x305   :  { %v1635_v28 = vpop.f32.mrf.mxu1 }
 0x312   :  { %440 = vrot.lane.b32.xlu1 %v2056_v15, %s1951_s2 }
 0x316   :  { %491 = vrot.lane.b32.xlu1 %v2052_v7, %s1952_s3 }
 0x386   :  { %v367_v29 = vpop.xlane.xlu0 %366 }
 0x387   :  { %v371_v30 = vsub.f32 %v315_v18, %v367_v29 }
 0x389   :  { %v373_v31 = vmul.f32 1.442695, %v371_v30 }
 0x38a   :  { %v370_v32 = vpop.xlane.xlu1 %369 }
 0x38b   :  { %1797 = vpow2.f32 %v373_v31  ;;  %v372_v33 = vsub.f32 %v358_v22, %v370_v32 }
 0x38d   :  { %v375_v34 = vmul.f32 1.442695, %v372_v33 }
 0x38e   :  { %v441_v35 = vpop.permute.xlu1 %440 }
 0x38f   :  { %1799 = vpow2.f32 %v375_v34  ;;  %v446_v40 = vsel %vm395_vm5, %v441_v35, 0 }
 0x390   :  { %1643 = vmatpush3.bf16.msra.mxu1 %v446_v40 }
 0x391   :  { %1654 = vmatprep.subr.bf16.mxu1 %v1949_v23 }
 0x392   :  { %v492_v47 = vpop.permute.xlu1 %491 }
 0x393   :  { %v497_v56 = vsel %vm274_vm3, %v492_v47, 0 }
 0x398   :  { %v1798_v42 = vpop.eup %1797 }
 0x399   :  { %v377_v43 = vsel %vm364_vm4, %v1798_v42, 0.0 }
 0x39a   :  { %378 = vadd.xlane.f32.xlu0 %v377_v43 }
 0x39c   :  { %v1800_v45 = vpop.eup %1799 }
 0x39d   :  { %v380_v46 = vsel %vm364_vm4, %v1800_v45, 0.0 }
 0x39e   :  { %381 = vadd.xlane.f32.xlu1 %v380_v46 }
 0x3af   :  { %539 = vrot.lane.b32.xlu1 %v2056_v15, %s1952_s3 }
 0x3b0   :  { %390 = vrot.lane.b32.xlu0 %v2052_v7, %s1951_s2 }
 0x3b4   :  { %489 = vrot.lane.b32.xlu0 %v2061_v17, %s1952_s3 }
 0x423   :  { %v379_v48 = vpop.xlane.xlu0 %378 }
 0x424   :  { %1801 = vrcp.f32 %v379_v48 }
 0x427   :  { %v382_v49 = vpop.xlane.xlu1 %381  ;;  %v391_v50 = vpop.permute.xlu0 %390 }
 0x428   :  { %1803 = vrcp.f32 %v382_v49  ;;  %v397_v51 = vsel %vm395_vm5, %v391_v50, 0 }
 0x429   :  { %1637 = vmatpush3.bf16.msra.mxu0 %v397_v51 }
 0x42a   :  { %1648 = vmatprep.subr.bf16.mxu0 %v1949_v23 }
 0x42b   :  { %v540_v58 = vpop.permute.xlu1 %539  ;;  %v490_v61 = vpop.permute.xlu0 %489 }
 0x42c   :  { %v542_v60 = vsel %vm274_vm3, %v540_v58, 0 }
 0x431   :  { %v1802_v52 = vpop.eup %1801 }
 0x432   :  { %v385_v53 = vmul.f32 %v1802_v52, %v1798_v42 }
 0x434   :  { %v387_v54 = vpack.c.bf16 %v385_v53, %v385_v53 }
 0x435   :  { %v1804_v55 = vpop.eup %1803 }
 0x436   :  { %1639 = vmatmul.mubr.msk.bf16.vlgmr.msra.gmra.mxu0 %vm274_vm3, %v387_v54  ;;  %v386_v57 = vmul.f32 %v1804_v55, %v1800_v45 }
 0x437   :  { %1649 = vmatpush3.bf16.xpose.msra.mxu0 %v497_v56  ;;  %1650 = vmatprep.mubr.msk.bf16.mxu0 %vm1950_vm2, %v1949_v23 }
 0x438   :  { %v388_v59 = vpack.c.bf16 %v386_v57, %v386_v57  ;;  %1660 = vmatprep.subr.bf16.mxu0 %v1949_v23 }
 0x43a   :  { %1645 = vmatmul.mubr.msk.bf16.vlgmr.msra.gmra.mxu1 %vm274_vm3, %v388_v59 }
 0x43b   :  { %1655 = vmatpush3.bf16.xpose.msra.mxu1 %v542_v60  ;;  %1656 = vmatprep.mubr.msk.bf16.mxu1 %vm1950_vm2, %v1949_v23 }
 0x43c   :  { %1666 = vmatprep.subr.bf16.mxu1 %v1949_v23 }
 0x43e   :  { %1651 = vmatmul.mubr.msk.bf16.vlgmr.msra.gmra.mxu0 %vm274_vm3, %v490_v61 }
 0x43f   :  { %1662 = vmatprep.mubr.msk.bf16.mxu0 %vm1950_vm2, %v1949_v23 }
 0x442   :  { %1657 = vmatmul.mubr.msk.bf16.vlgmr.msra.gmra.mxu1 %vm274_vm3, %v490_v61 }
 0x443   :  { %1668 = vmatprep.mubr.msk.bf16.mxu1 %vm1950_vm2, %v1949_v23 }
 0x4f6   :  { %v2101_v62 = vpop.f32.mrf.mxu0 }
 0x4f8   :  { %v1640_v63 = vpop.f32.mrf.mxu0 }
 0x4fa   :  { %v436_v0 = vpop.f32.mrf.mxu0  ;;  %v2103_v2 = vpop.f32.mrf.mxu1 }
 0x4fc   :  { %v1641_v3 = vpop.f32.mrf.mxu0  ;;  %v1646_v4 = vpop.f32.mrf.mxu1 }
 0x4fe   :  { %v485_v5 = vpop.f32.mrf.mxu1  ;;  %v533_v6 = vpop.f32.mrf.mxu0 }
 0x4ff   :  { %v584_v8 = vsel %vm364_vm4, %v533_v6, -inf }
 0x500   :  { %v1647_v9 = vpop.f32.mrf.mxu1  ;;  %585 = vmax.xlane.f32.xlu1 %v584_v8  ;;  %v1652_v10 = vpop.f32.mrf.mxu0 }
 0x502   :  { %v536_v11 = vpop.f32.mrf.mxu0  ;;  %v578_v12 = vpop.f32.mrf.mxu1 }
 0x503   :  { %v587_v13 = vsel %vm364_vm4, %v578_v12, -inf }
 0x504   :  { %588 = vmax.xlane.f32.xlu0 %v587_v13  ;;  %v1653_v14 = vpop.f32.mrf.mxu0  ;;  %v1658_v16 = vpop.f32.mrf.mxu1 }
 0x506   :  { %v581_v18 = vpop.f32.mrf.mxu1 }
 0x508   :  { %v1659_v19 = vpop.f32.mrf.mxu1 }
 0x511   :  { %608 = vrot.lane.b32.xlu1 %v2052_v7, %s1953_s11 }
 0x515   :  { %706 = vrot.lane.b32.xlu1 %v2052_v7, %s1954_s12 }
 0x519   :  { %754 = vrot.lane.b32.xlu1 %v2056_v15, %s1954_s12 }
 0x51d   :  { %704 = vrot.lane.b32.xlu1 %v2061_v17, %s1954_s12 }
 0x589   :  { %v586_v20 = vpop.xlane.xlu1 %585 }
 0x58a   :  { %v590_v21 = vsub.f32 %v533_v6, %v586_v20 }
 0x58c   :  { %v592_v22 = vmul.f32 1.442695, %v590_v21 }
 0x58d   :  { %v589_v24 = vpop.xlane.xlu0 %588  ;;  %v609_v25 = vpop.permute.xlu1 %608 }
 0x58e   :  { %1805 = vpow2.f32 %v592_v22  ;;  %v591_v26 = vsub.f32 %v578_v12, %v589_v24  ;;  %v614_v27 = vsel %vm395_vm5, %v609_v25, 0 }
 0x58f   :  { %1661 = vmatpush3.bf16.msra.mxu0 %v614_v27 }
 0x590   :  { %v594_v28 = vmul.f32 1.442695, %v591_v26  ;;  %1672 = vmatprep.subr.bf16.mxu0 %v1949_v23 }
 0x591   :  { %v707_v43 = vpop.permute.xlu1 %706 }
 0x592   :  { %1807 = vpow2.f32 %v594_v28  ;;  %v712_v48 = vsel %vm274_vm3, %v707_v43, 0 }
 0x595   :  { %v755_v50 = vpop.permute.xlu1 %754 }
 0x596   :  { %v757_v52 = vsel %vm274_vm3, %v755_v50, 0 }
 0x599   :  { %v705_v53 = vpop.permute.xlu1 %704 }
 0x59b   :  { %v1806_v29 = vpop.eup %1805 }
 0x59c   :  { %v596_v30 = vsel %vm364_vm4, %v1806_v29, 0.0 }
 0x59d   :  { %597 = vadd.xlane.f32.xlu0 %v596_v30 }
 0x59f   :  { %v1808_v31 = vpop.eup %1807 }
 0x5a0   :  { %v599_v32 = vsel %vm364_vm4, %v1808_v31, 0.0 }
 0x5a1   :  { %600 = vadd.xlane.f32.xlu0 %v599_v32 }
 0x5b7   :  { %656 = vrot.lane.b32.xlu0 %v2056_v15, %s1953_s11 }
 0x626   :  { %v598_v33 = vpop.xlane.xlu0 %597 }
 0x627   :  { %1809 = vrcp.f32 %v598_v33 }
 0x62a   :  { %v601_v34 = vpop.xlane.xlu0 %600 }
 0x62b   :  { %1811 = vrcp.f32 %v601_v34 }
 0x62e   :  { %v657_v35 = vpop.permute.xlu0 %656 }
 0x62f   :  { %v662_v40 = vsel %vm395_vm5, %v657_v35, 0 }
 0x630   :  { %1667 = vmatpush3.bf16.msra.mxu1 %v662_v40 }
 0x631   :  { %1678 = vmatprep.subr.bf16.mxu1 %v1949_v23 }
 0x634   :  { %v1810_v42 = vpop.eup %1809 }
 0x635   :  { %v604_v45 = vmul.f32 %v1810_v42, %v1806_v29 }
 0x637   :  { %v606_v46 = vpack.c.bf16 %v604_v45, %v604_v45 }
 0x638   :  { %v1812_v47 = vpop.eup %1811 }
 0x639   :  { %1663 = vmatmul.mubr.msk.bf16.vlgmr.msra.gmra.mxu0 %vm274_vm3, %v606_v46  ;;  %v605_v49 = vmul.f32 %v1812_v47, %v1808_v31 }
 0x63a   :  { %1673 = vmatpush3.bf16.xpose.msra.mxu0 %v712_v48  ;;  %1674 = vmatprep.mubr.msk.bf16.mxu0 %vm1950_vm2, %v1949_v23 }
 0x63b   :  { %v607_v51 = vpack.c.bf16 %v605_v49, %v605_v49  ;;  %1684 = vmatprep.subr.bf16.mxu0 %v1949_v23 }
 0x63d   :  { %1669 = vmatmul.mubr.msk.bf16.vlgmr.msra.gmra.mxu1 %vm274_vm3, %v607_v51 }
 0x63e   :  { %1679 = vmatpush3.bf16.xpose.msra.mxu1 %v757_v52  ;;  %1680 = vmatprep.mubr.msk.bf16.mxu1 %vm1950_vm2, %v1949_v23 }
 0x63f   :  { %1690 = vmatprep.subr.bf16.mxu1 %v1949_v23 }
 0x641   :  { %1675 = vmatmul.mubr.msk.bf16.vlgmr.msra.gmra.mxu0 %vm274_vm3, %v705_v53 }
 0x642   :  { %1686 = vmatprep.mubr.msk.bf16.mxu0 %vm1950_vm2, %v1949_v23 }
 0x645   :  { %1681 = vmatmul.mubr.msk.bf16.vlgmr.msra.gmra.mxu1 %vm274_vm3, %v705_v53 }
 0x646   :  { %1692 = vmatprep.mubr.msk.bf16.mxu1 %vm1950_vm2, %v1949_v23 }
 0x6f9   :  { %v2134_v54 = vpop.f32.mrf.mxu0 }
 0x6fb   :  { %v1664_v55 = vpop.f32.mrf.mxu0 }
 0x6fd   :  { %v653_v56 = vpop.f32.mrf.mxu0  ;;  %v2136_v57 = vpop.f32.mrf.mxu1 }
 0x6ff   :  { %v1665_v58 = vpop.f32.mrf.mxu0  ;;  %v1670_v59 = vpop.f32.mrf.mxu1 }
 0x701   :  { %v701_v60 = vpop.f32.mrf.mxu1  ;;  %v748_v61 = vpop.f32.mrf.mxu0 }
 0x702   :  { %v799_v63 = vsel %vm364_vm4, %v748_v61, -inf }
 0x703   :  { %v1671_v0 = vpop.f32.mrf.mxu1  ;;  %800 = vmax.xlane.f32.xlu0 %v799_v63  ;;  %v1676_v3 = vpop.f32.mrf.mxu0 }
 0x705   :  { %v751_v4 = vpop.f32.mrf.mxu0  ;;  %v793_v5 = vpop.f32.mrf.mxu1 }
 0x706   :  { %v802_v6 = vsel %vm364_vm4, %v793_v5, -inf }
 0x707   :  { %803 = vmax.xlane.f32.xlu1 %v802_v6  ;;  %v1677_v8 = vpop.f32.mrf.mxu0  ;;  %v1682_v9 = vpop.f32.mrf.mxu1 }
 0x709   :  { %v796_v10 = vpop.f32.mrf.mxu1 }
 0x70b   :  { %v1683_v11 = vpop.f32.mrf.mxu1 }
 0x718   :  { %871 = vrot.lane.b32.xlu1 %v2056_v15, %s1955_s13 }
 0x71c   :  { %921 = vrot.lane.b32.xlu1 %v2052_v7, %s1956_s14 }
 0x720   :  { %969 = vrot.lane.b32.xlu1 %v2056_v15, %s1956_s14 }
 0x78c   :  { %v801_v12 = vpop.xlane.xlu0 %800 }
 0x78d   :  { %v805_v13 = vsub.f32 %v748_v61, %v801_v12 }
 0x78f   :  { %v807_v14 = vmul.f32 1.442695, %v805_v13 }
 0x790   :  { %v804_v16 = vpop.xlane.xlu1 %803 }
 0x791   :  { %1813 = vpow2.f32 %v807_v14  ;;  %v806_v18 = vsub.f32 %v793_v5, %v804_v16 }
 0x793   :  { %v809_v19 = vmul.f32 1.442695, %v806_v18 }
 0x794   :  { %v872_v20 = vpop.permute.xlu1 %871 }
 0x795   :  { %1815 = vpow2.f32 %v809_v19  ;;  %v877_v21 = vsel %vm395_vm5, %v872_v20, 0 }
 0x796   :  { %1691 = vmatpush3.bf16.msra.mxu1 %v877_v21 }
 0x797   :  { %1702 = vmatprep.subr.bf16.mxu1 %v1949_v23 }
 0x798   :  { %v922_v32 = vpop.permute.xlu1 %921 }
 0x799   :  { %v927_v40 = vsel %vm274_vm3, %v922_v32, 0 }
 0x79c   :  { %v970_v42 = vpop.permute.xlu1 %969 }
 0x79d   :  { %v972_v45 = vsel %vm274_vm3, %v970_v42, 0 }
 0x79e   :  { %v1814_v22 = vpop.eup %1813 }
 0x79f   :  { %v811_v24 = vsel %vm364_vm4, %v1814_v22, 0.0 }
 0x7a0   :  { %812 = vadd.xlane.f32.xlu0 %v811_v24 }
 0x7a2   :  { %v1816_v25 = vpop.eup %1815 }
 0x7a3   :  { %v814_v26 = vsel %vm364_vm4, %v1816_v25, 0.0 }
 0x7a4   :  { %815 = vadd.xlane.f32.xlu0 %v814_v26 }
 0x7ba   :  { %823 = vrot.lane.b32.xlu0 %v2052_v7, %s1955_s13 }
 0x7be   :  { %919 = vrot.lane.b32.xlu0 %v2061_v17, %s1956_s14 }
 0x829   :  { %v813_v27 = vpop.xlane.xlu0 %812 }
 0x82a   :  { %1817 = vrcp.f32 %v813_v27 }
 0x82d   :  { %v816_v28 = vpop.xlane.xlu0 %815 }
 0x82e   :  { %1819 = vrcp.f32 %v816_v28  ;;  %v1779_v28 = vld [vmem:[#allocation8 + $0x38] ss:$24 sps:$4 sm:$0xff]  }
 0x831   :  { %v824_v29 = vpop.permute.xlu0 %823 }
 0x832   :  { %v829_v30 = vsel %vm395_vm5, %v824_v29, 0  ;;  %v1781_v29 = vld [vmem:[#allocation8 + $0x8] ss:$24 sps:$4 sm:$0xff]  }
 0x833   :  { %1685 = vmatpush3.bf16.msra.mxu0 %v829_v30 }
 0x834   :  { %1696 = vmatprep.subr.bf16.mxu0 %v1949_v23 }
 0x835   :  { %v920_v46 = vpop.permute.xlu0 %919 }
 0x837   :  { %v1818_v31 = vpop.eup %1817 }
 0x838   :  { %v819_v33 = vmul.f32 %v1818_v31, %v1814_v22 }
 0x83a   :  { %v821_v34 = vpack.c.bf16 %v819_v33, %v819_v33 }
 0x83b   :  { %v1820_v35 = vpop.eup %1819 }
 0x83c   :  { %1687 = vmatmul.mubr.msk.bf16.vlgmr.msra.gmra.mxu0 %vm274_vm3, %v821_v34  ;;  %v820_v17 = vmul.f32 %v1820_v35, %v1816_v25 }
 0x83d   :  { %1697 = vmatpush3.bf16.xpose.msra.mxu0 %v927_v40  ;;  %1698 = vmatprep.mubr.msk.bf16.mxu0 %vm1950_vm2, %v1949_v23 }
 0x83e   :  { %v822_v43 = vpack.c.bf16 %v820_v17, %v820_v17  ;;  %1708 = vmatprep.subr.bf16.mxu0 %v1949_v23 }
 0x840   :  { %1693 = vmatmul.mubr.msk.bf16.vlgmr.msra.gmra.mxu1 %vm274_vm3, %v822_v43 }
 0x841   :  { %1703 = vmatpush3.bf16.xpose.msra.mxu1 %v972_v45  ;;  %1704 = vmatprep.mubr.msk.bf16.mxu1 %vm1950_vm2, %v1949_v23 }
 0x842   :  { %1714 = vmatprep.subr.bf16.mxu1 %v1949_v23 }
 0x844   :  { %1699 = vmatmul.mubr.msk.bf16.vlgmr.msra.gmra.mxu0 %vm274_vm3, %v920_v46 }
 0x845   :  { %1710 = vmatprep.mubr.msk.bf16.mxu0 %vm1950_vm2, %v1949_v23 }
 0x848   :  { %1705 = vmatmul.mubr.msk.bf16.vlgmr.msra.gmra.mxu1 %vm274_vm3, %v920_v46 }
 0x849   :  { %1716 = vmatprep.mubr.msk.bf16.mxu1 %vm1950_vm2, %v1949_v23 }
 0x8fc   :  { %v865_v47 = vpop.f32.mrf.mxu0 }
 0x8fe   :  { %v1688_v48 = vpop.f32.mrf.mxu0 }
 0x900   :  { %v868_v49 = vpop.f32.mrf.mxu0  ;;  %v913_v50 = vpop.f32.mrf.mxu1 }
 0x902   :  { %v1689_v51 = vpop.f32.mrf.mxu0  ;;  %v1694_v52 = vpop.f32.mrf.mxu1 }
 0x904   :  { %v916_v53 = vpop.f32.mrf.mxu1  ;;  %v963_v55 = vpop.f32.mrf.mxu0 }
 0x905   :  { %v1014_v56 = vsel %vm364_vm4, %v963_v55, -inf }
 0x906   :  { %v1695_v58 = vpop.f32.mrf.mxu1  ;;  %1015 = vmax.xlane.f32.xlu1 %v1014_v56  ;;  %v1700_v59 = vpop.f32.mrf.mxu0 }
 0x907   :  { %v1173_v59 = vsub.s32 6, %v2022_v36 }
 0x908   :  { %v966_v60 = vpop.f32.mrf.mxu0  ;;  %v1008_v61 = vpop.f32.mrf.mxu1 }
 0x909   :  { %v1017_v63 = vsel %vm364_vm4, %v1008_v61, -inf  ;;  %v1174_v60 = vrot.slane %v2025_v38, %v1173_v59 }
 0x90a   :  { %1018 = vmax.xlane.f32.xlu0 %v1017_v63  ;;  %v1701_v0 = vpop.f32.mrf.mxu0  ;;  %v1706_v3 = vpop.f32.mrf.mxu1 }
 0x90c   :  { %v1011_v4 = vpop.f32.mrf.mxu1 }
 0x90e   :  { %v1707_v5 = vpop.f32.mrf.mxu1 }
 0x917   :  { %1038 = vrot.lane.b32.xlu1 %v2052_v7, %s1957_s15 }
 0x91b   :  { %1136 = vrot.lane.b32.xlu1 %v2134_v54, %s1944_s24 }
 0x91f   :  { %1138 = vrot.lane.b32.xlu1 %v2136_v57, %s1944_s24 }
 0x923   :  { %1144 = vrot.lane.b32.xlu1 %v865_v47, %s1958_s16 }
 0x98f   :  { %v1016_v6 = vpop.xlane.xlu1 %1015 }
 0x990   :  { %v1020_v8 = vsub.f32 %v963_v55, %v1016_v6 }
 0x992   :  { %v1022_v9 = vmul.f32 1.442695, %v1020_v8 }
 0x993   :  { %v1019_v10 = vpop.xlane.xlu0 %1018  ;;  %v1039_v11 = vpop.permute.xlu1 %1038 }
 0x994   :  { %1821 = vpow2.f32 %v1022_v9  ;;  %v1021_v12 = vsub.f32 %v1008_v61, %v1019_v10  ;;  %v1044_v13 = vsel %vm395_vm5, %v1039_v11, 0  ;;  %v1959_v9 = vmov 839922192  }
 0x995   :  { %1709 = vmatpush3.bf16.msra.mxu0 %v1044_v13  ;;  %v1245_v10 = vunpack.c.l.s4 %v1959_v9  ;;  %v1960_v11 = vmov 1985246804  }
 0x996   :  { %v1024_v14 = vmul.f32 1.442695, %v1021_v12  ;;  %1720 = vmatprep.subr.bf16.mxu0 %v1949_v23  ;;  %v1252_v12 = vunpack.c.l.s4 %v1960_v11 }
 0x997   :  { %v1137_v42 = vpop.permute.xlu1 %1136  ;;  %v1246_v13 = vunpack.c.0.s8 %v1245_v10 }
 0x998   :  { %1823 = vpow2.f32 %v1024_v14  ;;  %v1158_v48 = vsel %vm274_vm3, %v2101_v62, %v1137_v42  ;;  %v1253_v14 = vunpack.c.0.s8 %v1252_v12 }
 0x99b   :  { %v1139_v43 = vpop.permute.xlu1 %1138 }
 0x99c   :  { %v1159_v49 = vsel %vm274_vm3, %v2103_v2, %v1139_v43 }
 0x99f   :  { %v1145_v45 = vpop.permute.xlu1 %1144 }
 0x9a1   :  { %v1822_v7 = vpop.eup %1821 }
 0x9a2   :  { %v1026_v54 = vsel %vm364_vm4, %v1822_v7, 0.0 }
 0x9a3   :  { %1027 = vadd.xlane.f32.xlu0 %v1026_v54  ;;  %v1256_v54 = vsub.s32 %v1253_v14, %v2022_v36 }
 0x9a5   :  { %v1824_v57 = vpop.eup %1823 }
 0x9a6   :  { %v1029_v16 = vsel %vm364_vm4, %v1824_v57, 0.0 }
 0x9a7   :  { %1030 = vadd.xlane.f32.xlu0 %v1029_v16 }
 0x9bd   :  { %1086 = vrot.lane.b32.xlu0 %v2056_v15, %s1957_s15 }
 0x9c1   :  { %1146 = vrot.lane.b32.xlu0 %v913_v50, %s1958_s16  ;;  %v1161_v50 = vsel %vm1160_vm6, %v1158_v48, %v1145_v45 }
 0xa2c   :  { %v1028_v18 = vpop.xlane.xlu0 %1027 }
 0xa2d   :  { %1825 = vrcp.f32 %v1028_v18 }
 0xa30   :  { %v1031_v19 = vpop.xlane.xlu0 %1030 }
 0xa31   :  { %1827 = vrcp.f32 %v1031_v19 }
 0xa34   :  { %v1087_v20 = vpop.permute.xlu0 %1086 }
 0xa35   :  { %v1092_v21 = vsel %vm395_vm5, %v1087_v20, 0 }
 0xa36   :  { %1715 = vmatpush3.bf16.msra.mxu1 %v1092_v21 }
 0xa37   :  { %1728 = vmatprep.subr.bf16.mxu1 %v1949_v23 }
 0xa38   :  { %v1147_v46 = vpop.permute.xlu0 %1146 }
 0xa39   :  { %v1162_v51 = vsel %vm1160_vm6, %v1159_v49, %v1147_v46 }
 0xa3a   :  { %v1826_v22 = vpop.eup %1825 }
 0xa3b   :  { %v1034_v24 = vmul.f32 %v1826_v22, %v1822_v7  ;;  %v1249_v7 = vsub.s32 %v1246_v13, %v2022_v36 }
 0xa3d   :  { %v1036_v25 = vpack.c.bf16 %v1034_v24, %v1034_v24 }
 0xa3e   :  { %v1828_v26 = vpop.eup %1827 }
 0xa3f   :  { %1711 = vmatmul.mubr.msk.bf16.vlgmr.msra.gmra.mxu0 %vm274_vm3, %v1036_v25  ;;  %v1035_v27 = vmul.f32 %v1828_v26, %v1824_v57  ;;  %v1783_v26 = vld [vmem:[#allocation8 + $0x3c] ss:$24 sps:$4 sm:$0xff]  }
 0xa40   :  { %1724 = vmatprep.mubr.msk.bf16.mxu0 %vm1950_vm2, %v1949_v23  ;;  %1721 = vmatpush3.bf16.msra.mxu0 %v1779_v28 }
 0xa41   :  { %v1037_v15 = vpack.c.bf16 %v1035_v27, %v1035_v27  ;;  %1722 = vmatprep.subr.bf16.mxu0 %v1949_v23  ;;  %v1784_v27 = vld [vmem:[#allocation8 + $0xc] ss:$24 sps:$4 sm:$0xff]  }
 0xa43   :  { %1717 = vmatmul.mubr.msk.bf16.vlgmr.msra.gmra.mxu1 %vm274_vm3, %v1037_v15 }
 0xa44   :  { %1732 = vmatprep.mubr.msk.bf16.mxu1 %vm1950_vm2, %v1949_v23  ;;  %1723 = vmatpush3.bf16.msra.mxu0 %v1781_v29 }
 0xa45   :  { %1736 = vmatprep.subr.bf16.mxu0 %v1949_v23  ;;  %1729 = vmatpush3.bf16.msra.mxu1 %v1783_v26 }
 0xa46   :  { %1730 = vmatprep.subr.bf16.mxu1 %v1949_v23 }
 0xa49   :  { %1731 = vmatpush3.bf16.msra.mxu1 %v1784_v27 }
 0xa4a   :  { %1744 = vmatprep.subr.bf16.mxu1 %v1949_v23 }
 0xaff   :  { %v1080_v30 = vpop.f32.mrf.mxu0 }
 0xb00   :  { %1152 = vrot.lane.b32.xlu1 %v1080_v30, %s1948_s8  ;;  %v1295_v30 = vsub.s32 7, %v2022_v36 }
 0xb01   :  { %v1712_v31 = vpop.f32.mrf.mxu0 }
 0xb02   :  { %v73_v31 = vld [vmem:[#allocation7 + $0x8] sm:$0xff] }
 0xb03   :  { %v1083_v32 = vpop.f32.mrf.mxu0  ;;  %v1128_v33 = vpop.f32.mrf.mxu1 }
 0xb04   :  { %1154 = vrot.lane.b32.xlu0 %v1128_v33, %s1948_s8  ;;  %v1296_v32 = vrot.slane %v2025_v38, %v1295_v30  ;;  %v1305_v33 = vrot.slane %v73_v31, %v106_v39  ;;  %v1785_v38 = vld [vmem:[#allocation8 + $0x40] ss:$24 sps:$4 sm:$0xff]   ;;  %v1787_v39 = vld [vmem:[#allocation8 + $0x10] ss:$24 sps:$4 sm:$0xff]  }
 0xb05   :  { %v1713_v34 = vpop.f32.mrf.mxu0  ;;  %v1718_v35 = vpop.f32.mrf.mxu1 }
 0xb06   :  { %v1307_v45 = vcombine.high %v1305_v33, %v1305_v33 }
 0xb07   :  { %v1131_v40 = vpop.f32.mrf.mxu1 }
 0xb09   :  { %v1719_v17 = vpop.f32.mrf.mxu1 }
 0xb0a   :  { %v1298_v17 = vcombine.high %v1296_v32, %v1296_v32 }
 0xb72   :  { %v1153_v47 = vpop.permute.xlu1 %1152 }
 0xb73   :  { %v1164_v53 = vsel %vm1163_vm7, %v1161_v50, %v1153_v47 }
 0xb76   :  { %v1155_v52 = vpop.permute.xlu0 %1154 }
 0xb77   :  { %v1165_v55 = vsel %vm1163_vm7, %v1162_v51, %v1155_v52  ;;  %v1319_v52 = vrot.slane %v73_v31, %v111_v41  ;;  %v1440_v41 = vrot.slane %v73_v31, %v205_v37 }
 0xb78   :  { %v1168_v56 = vcombine.low %v1164_v53, %v1165_v55 }
 0xb79   :  { %v1442_v11 = vcombine.high %v1440_v41, %v1440_v41 }
 0xb7a   :  { %v1170_v58 = vpack.c.bf16 %v1168_v56, %v1168_v56 }
 0xb7c   :  { %1725 = vmatmul.mubr.msk.bf16.vlgmr.msra.gmra.mxu0 %vm131_vm0, %v1170_v58 }
 0xb7d   :  { %1740 = vmatprep.mubr.msk.bf16.mxu0 %vm1950_vm2, %v1949_v23  ;;  %1737 = vmatpush3.bf16.msra.mxu0 %v1785_v38 }
 0xb7e   :  { %1738 = vmatprep.subr.bf16.mxu0 %v1949_v23 }
 0xb81   :  { %1739 = vmatpush3.bf16.msra.mxu0 %v1787_v39 }
 0xc3c   :  { %v1224_v62 = vpop.f32.mrf.mxu0 }
 0xc3d   :  { %v1225_v61 = vadd.f32 %v1224_v62, %v1174_v60 }
 0xc3e   :  { %v1726_v63 = vpop.f32.mrf.mxu0 }
 0xc3f   :  { %v1231_v2 = vcombine.high %v1225_v61, %v1225_v61  ;;  %v2201_v3 = vadd.f32 %v1225_v61, %v2002_v1 }
 0xc40   :  { %v1227_v0 = vpop.f32.mrf.mxu0 }
 0xc41   :  { %v2204_v4 = vadd.f32 %v1231_v2, %v2002_v1 }
 0xc42   :  { %v1727_v5 = vpop.f32.mrf.mxu0 }
 0xc43   :  { %v1237_v6 = vcombine.low %v2201_v3, %v2204_v4  ;;  %v1789_v5 = vld [vmem:[#allocation8 + $0x44] ss:$24 sps:$4 sm:$0xff]  }
 0xc45   :  { %v1239_v8 = vsel %vm131_vm0, %v1237_v6, 0.0  ;;  %v1790_v6 = vld [vmem:[#allocation8 + $0x14] ss:$24 sps:$4 sm:$0xff]  }
 0xc46   :  { %1240 = vadd.xlane.f32.xlu1 %v1239_v8 }
 0xccf   :  { %v1241_v57 = vpop.xlane.xlu1 %1240 }
 0xcd0   :  { %v1242_v1 = vmul.f32 0.03125, %v1241_v57 }
 0xcd2   :  { %v1250_v16 = vrot.slane %v1242_v1, %v1249_v7  ;;  %v1257_v18 = vrot.slane %v1242_v1, %v1256_v54 }
 0xcd4   :  { %v1260_v19 = vsub.f32 %v2201_v3, %v1250_v16  ;;  %v1261_v20 = vsub.f32 %v2204_v4, %v1257_v18 }
 0xcd6   :  { %v1262_v21 = vmul.f32 %v1260_v19, %v1260_v19  ;;  %v1263_v22 = vmul.f32 %v1261_v20, %v1261_v20 }
 0xcd8   :  { %v1266_v24 = vcombine.low %v1262_v21, %v1263_v22 }
 0xcda   :  { %v1268_v25 = vsel %vm131_vm0, %v1266_v24, 0.0 }
 0xcdb   :  { %1269 = vadd.xlane.f32.xlu0 %v1268_v25 }
 0xd64   :  { %v1270_v15 = vpop.xlane.xlu0 %1269 }
 0xd65   :  { %v1271_v28 = vmul.f32 0.03125, %v1270_v15 }
 0xd67   :  { %v1272_v29 = vadd.f32 1e-05, %v1271_v28 }
 0xd69   :  { %1829 = vrsqrt.f32 %v1272_v29 }
 0xd76   :  { %v1830_v34 = vpop.eup %1829 }
 0xd77   :  { %v1281_v35 = vrot.slane %v1830_v34, %v1249_v7  ;;  %v1288_v40 = vrot.slane %v1830_v34, %v1256_v54 }
 0xd79   :  { %v1291_v42 = vmul.f32 %v1281_v35, %v1260_v19  ;;  %v1292_v43 = vmul.f32 %v1288_v40, %v1261_v20 }
 0xd7b   :  { %v1300_v46 = vmul.f32 %v1296_v32, %v1291_v42  ;;  %v1301_v47 = vmul.f32 %v1298_v17, %v1292_v43 }
 0xd7d   :  { %v1309_v48 = vadd.f32 %v1305_v33, %v1300_v46  ;;  %v1310_v49 = vadd.f32 %v1307_v45, %v1301_v47 }
 0xd7f   :  { %v1313_v50 = vcombine.low %v1309_v48, %v1310_v49 }
 0xd81   :  { %v1315_v51 = vpack.c.bf16 %v1313_v50, %v1313_v50 }
 0xd83   :  { %1733 = vmatmul.mubr.msk.bf16.vlgmr.msra.gmra.mxu1 %vm131_vm0, %v1315_v51 }
 0xd84   :  { %1748 = vmatprep.mubr.msk.bf16.mxu1 %vm1950_vm2, %v1949_v23  ;;  %1745 = vmatpush3.bf16.msra.mxu1 %v1789_v5 }
 0xd85   :  { %1746 = vmatprep.subr.bf16.mxu1 %v1949_v23  ;;  %v1454_v23 = vrot.slane %v73_v31, %v211_v44 }
 0xd88   :  { %1747 = vmatpush3.bf16.msra.mxu1 %v1790_v6 }
 0xe43   :  { %v1365_v53 = vpop.f32.mrf.mxu1 }
 0xe44   :  { %v1366_v55 = vadd.f32 %v1365_v53, %v1319_v52 }
 0xe45   :  { %v1734_v56 = vpop.f32.mrf.mxu1 }
 0xe46   :  { %v1372_v58 = vmul.f32 0.70710677, %v1366_v55  ;;  %v1371_v61 = vmul.f32 0.5, %v1366_v55 }
 0xe47   :  { %v1368_v59 = vpop.f32.mrf.mxu1 }
 0xe48   :  { %1831 = verf.f32 %v1372_v58 }
 0xe49   :  { %v1735_v60 = vpop.f32.mrf.mxu1 }
 0xe55   :  { %v1832_v62 = vpop.eup %1831 }
 0xe56   :  { %v1374_v63 = vadd.f32 1.0, %v1832_v62 }
 0xe58   :  { %v1375_v2 = vmul.f32 %v1374_v63, %v1371_v61 }
 0xe5a   :  { %v1376_v0 = vpack.c.bf16 %v1375_v2, %v1375_v2 }
 0xe5c   :  { %1741 = vmatmul.mubr.msk.bf16.vlgmr.msra.gmra.mxu0 %vm131_vm0, %v1376_v0 }
 0xf1c   :  { %v1426_v8 = vpop.f32.mrf.mxu0 }
 0xf1d   :  { %v1433_v9 = vcombine.high %v1426_v8, %v1426_v8  ;;  %v1435_v10 = vadd.f32 %v1426_v8, %v2201_v3 }
 0xf1e   :  { %v1742_v12 = vpop.f32.mrf.mxu0 }
 0xf1f   :  { %v1436_v13 = vadd.f32 %v1433_v9, %v2204_v4  ;;  %v1444_v7 = vadd.f32 %v1440_v41, %v1435_v10 }
 0xf20   :  { %v1429_v14 = vpop.f32.mrf.mxu0 }
 0xf21   :  { %v1445_v54 = vadd.f32 %v1442_v11, %v1436_v13 }
 0xf22   :  { %v1743_v57 = vpop.f32.mrf.mxu0 }
 0xf23   :  { %v1448_v1 = vcombine.low %v1444_v7, %v1445_v54 }
 0xf25   :  { %v1450_v16 = vpack.c.bf16 %v1448_v1, %v1448_v1 }
 0xf27   :  { %1749 = vmatmul.mubr.msk.bf16.vlgmr.msra.gmra.mxu1 %vm131_vm0, %v1450_v16 }
 0xfe7   :  { %v1500_v37 = vpop.f32.mrf.mxu1 }
 0xfe8   :  { %v1501_v18 = vadd.f32 %v1500_v37, %v1454_v23 }
 0xfe9   :  { %v1750_v3 = vpop.f32.mrf.mxu1 }
 0xfea   :  { %1506 = vst [vmem:[#allocation10] sm:$0xff] %v1501_v18 }
 0xfeb   :  { %v1503_v19 = vpop.f32.mrf.mxu1 }
 0xfec   :  { %1924 = shalt.err (!%p1921_p10)
}
 0xfed   :  { %1516 = dma.vmem_to_hbm [thread:$0]  %s1514_s18, 128, %s2242_s4, [#allocation4]   ;;  %v1751_v36 = vpop.f32.mrf.mxu1 }
 0xfee   :  { %1939 = dma.done.wait [#allocation4], 128  }
 0xfef   :  { %1940 = vsyncadd [#allocation4], 4294967168 }
 0xff0   :  { %1520 = vsyncpa [#allocation3], 1 }
 0xff1   :  { %1521 = vsyncpa [#allocation6], 1 }
 0xff2   :  { %1522 = vsyncpa [#allocation9], 1 }
 0xff3   :  { %1523 = vsyncpa [#allocation4], 1 }

</bundles_post_ra>
